<compile_context>
chip_gen: v6e
topology: v6e:2x2x1
jax: 0.10.0
libtpu: 0.0.40
codegen_flags: <defaults>
</compile_context>

<pallas_src>
import functools

import jax
import jax.numpy as jnp
from jax.experimental import pallas as pl
from jax.experimental.pallas import tpu as pltpu


# ----------------------------------------------------------------------------
# Kernel
# ----------------------------------------------------------------------------
def _policy_value_kernel(obs_ref,
                         w1_ref, b1_ref,
                         w2_ref, b2_ref,
                         w3_ref, b3_ref,
                         w4_ref, b4_ref,
                         wh_ref, bh_ref,
                         scale_ref, off_ref,
                         out_ref, *, bf16_act):
    bf16 = jnp.bfloat16
    act_dtype = bf16 if bf16_act else jnp.float32

    def dense(x, w_ref, b_ref):
        # bf16 x bf16 -> f32 accumulate on the MXU; bias added in f32.
        return jnp.dot(x.astype(bf16), w_ref[...],
                       preferred_element_type=jnp.float32) + b_ref[...]

    x = obs_ref[...]                                            # (Bt, 9)  f32

    # trunk: 4 x (Linear -> tanh); tanh in bf16 on v6e/v7x, f32 on v5e.
    x = jnp.tanh(dense(x, w1_ref, b1_ref).astype(act_dtype))   # (Bt, 256)
    x = jnp.tanh(dense(x, w2_ref, b2_ref).astype(act_dtype))   # (Bt, 512)
    x = jnp.tanh(dense(x, w3_ref, b3_ref).astype(act_dtype))   # (Bt, 512)
    x = jnp.tanh(dense(x, w4_ref, b4_ref).astype(act_dtype))   # (Bt, 512)

    # Folded heads: one (512, 128) matmul.
    #   cols 0..8  = 0.5 * (policy pre-sigmoid)
    #   col  9     = value pre-tanh
    #   cols 10..  = zero (discarded by the wrapper)
    y = dense(x, wh_ref, bh_ref)                                # (Bt, 128) f32

    # Single tanh finishes both heads: sigmoid(z) = 0.5 + 0.5*tanh(z/2).
    t = jnp.tanh(y)
    out_ref[...] = (scale_ref[...] * t + off_ref[...]).astype(out_ref.dtype)


# ----------------------------------------------------------------------------
# Parameter construction / preparation
# ----------------------------------------------------------------------------
def init_params(key):
    """Deterministic PyTorch-style Linear init: U(-1/sqrt(fan_in), 1/sqrt(fan_in)).

    Weights are stored already transposed to (in, out), biases as (1, out), f32."""
    layer_dims = [
        ("w1", 9, 256), ("w2", 256, 512), ("w3", 512, 512), ("w4", 512, 512),
        ("wph", 512, 2048), ("wpo", 2048, 9),
        ("wvh", 512, 2048), ("wvo", 2048, 1),
    ]
    params = {}
    for name, fan_in, fan_out in layer_dims:
        key, kw, kb = jax.random.split(key, 3)
        bound = 1.0 / (fan_in ** 0.5)
        params[name] = jax.random.uniform(
            kw, (fan_in, fan_out), jnp.float32, minval=-bound, maxval=bound)
        params["b" + name[1:]] = jax.random.uniform(
            kb, (1, fan_out), jnp.float32, minval=-bound, maxval=bound)
    return params


def prepare_params(params):
    """One-time head fold + bf16 cast of weights for the kernel.

    The heads compose affinely (no activation between head-hidden and
    head-output Linears), so they are folded in f32 and cast to bf16 once.
    Policy columns are pre-scaled by 0.5 so the kernel only needs a single
    tanh on the head output (sigmoid(z) = 0.5 + 0.5*tanh(z/2))."""
    bf16 = jnp.bfloat16
    f32 = jnp.float32

    wp = (params["wph"] @ params["wpo"]) * 0.5                       # (512, 9)
    bp = (params["bph"] @ params["wpo"] + params["bpo"]) * 0.5       # (1, 9)
    wv = params["wvh"] @ params["wvo"]                               # (512, 1)
    bv = params["bvh"] @ params["wvo"] + params["bvo"]               # (1, 1)

    wh = jnp.zeros((512, 128), f32).at[:, :9].set(wp).at[:, 9:10].set(wv)
    bh = jnp.zeros((1, 128), f32).at[:, :9].set(bp).at[:, 9:10].set(bv)

    # Per-column (scale, offset) applied after the single tanh:
    #   policy cols: 0.5 * tanh + 0.5   (== sigmoid of the unscaled pre-act)
    #   value  col : 1.0 * tanh + 0.0
    #   padding    : 0.0 * tanh + 0.0
    scale = jnp.zeros((1, 128), f32).at[:, :9].set(0.5).at[:, 9:10].set(1.0)
    off = jnp.zeros((1, 128), f32).at[:, :9].set(0.5)

    return {
        "w1": params["w1"].astype(bf16), "b1": params["b1"],
        "w2": params["w2"].astype(bf16), "b2": params["b2"],
        "w3": params["w3"].astype(bf16), "b3": params["b3"],
        "w4": params["w4"].astype(bf16), "b4": params["b4"],
        "wh": wh.astype(bf16), "bh": bh,
        "scale": scale, "off": off,
    }


# ----------------------------------------------------------------------------
# pallas_call wrapper
# ----------------------------------------------------------------------------
def _round_up(x, m):
    return ((x + m - 1) // m) * m


def _use_bf16_activations():
    """bf16 trunk tanh only where the VPU/EUP have bf16 paths (v6e / v7x)."""
    try:
        kind = jax.devices()[0].device_kind.lower()
    except Exception:
        return False
    return ("v6" in kind) or ("v7" in kind)


@functools.partial(jax.jit, static_argnames=("b_tile", "bf16_act", "out_dtype"))
def _forward_padded(obs_pad, kp, b_tile, bf16_act, out_dtype):
    B_pad = obs_pad.shape[0]
    grid = (B_pad // b_tile,)

    def wspec(shape):
        # Full-array block, same block index every grid step -> weights are
        # DMA'd once and stay resident in VMEM (post-fold: ~1.4 MB bf16 total,
        # so default double-buffering of these constants is harmless).
        return pl.BlockSpec(shape, lambda i: (0, 0))

    kernel = functools.partial(_policy_value_kernel, bf16_act=bf16_act)

    out = pl.pallas_call(
        kernel,
        out_shape=jax.ShapeDtypeStruct((B_pad, 128), out_dtype),
        grid_spec=pltpu.PrefetchScalarGridSpec(
            num_scalar_prefetch=0,
            grid=grid,
            in_specs=[
                pl.BlockSpec((b_tile, 9), lambda i: (i, 0)),   # obs tile
                wspec((9, 256)),    wspec((1, 256)),
                wspec((256, 512)),  wspec((1, 512)),
                wspec((512, 512)),  wspec((1, 512)),
                wspec((512, 512)),  wspec((1, 512)),
                wspec((512, 128)),  wspec((1, 128)),           # folded heads
                wspec((1, 128)),    wspec((1, 128)),           # scale / offset
            ],
            out_specs=pl.BlockSpec((b_tile, 128), lambda i: (i, 0)),
        ),
        compiler_params=pltpu.CompilerParams(
            dimension_semantics=("parallel",),
            vmem_limit_bytes=32 << 20,
        ),
    )(obs_pad,
      kp["w1"], kp["b1"], kp["w2"], kp["b2"],
      kp["w3"], kp["b3"], kp["w4"], kp["b4"],
      kp["wh"], kp["bh"], kp["scale"], kp["off"])
    return out


def policy_value_forward(obs, kernel_params, b_tile=256, bf16_act=None,
                         out_dtype=jnp.float32):
    """Returns (policy (B, 9), value (B, 1)) matching the PyTorch forward."""
    B = obs.shape[0]
    if bf16_act is None:
        bf16_act = _use_bf16_activations()
    # Default b_tile=256 keeps >=2 "parallel" grid steps whenever B exceeds one
    # tile, so v7x can shard the batch axis across both TensorCores.  For large
    # batches on v5e/v6e (128 MiB VMEM), b_tile=512 can be requested explicitly.
    bt = min(b_tile, _round_up(max(B, 1), 8))      # sublane-aligned batch tile
    B_pad = _round_up(B, bt)
    obs_pad = obs if B_pad == B else jnp.pad(obs, ((0, B_pad - B), (0, 0)))

    out = _forward_padded(obs_pad, kernel_params, bt, bool(bf16_act), out_dtype)
    policy = out[:B, :9]
    value = out[:B, 9:10]
    return policy, value


# ----------------------------------------------------------------------------
# References
# ----------------------------------------------------------------------------
def _reference_forward_f32(obs, params):
    """Pure-f32 JAX reference matching the PyTorch forward semantics."""
    x = jnp.tanh(obs @ params["w1"] + params["b1"])
    x = jnp.tanh(x @ params["w2"] + params["b2"])
    x = jnp.tanh(x @ params["w3"] + params["b3"])
    x = jnp.tanh(x @ params["w4"] + params["b4"])
    p = (x @ params["wph"] + params["bph"]) @ params["wpo"] + params["bpo"]
    policy = jax.nn.sigmoid(p)
    v = (x @ params["wvh"] + params["bvh"]) @ params["wvo"] + params["bvo"]
    value = jnp.tanh(v)
    return policy, value


def _reference_forward_kernel_math(obs, kparams, bf16_act):
    """Reference mirroring the kernel's folded bf16-weight / f32-accum math."""
    bf16 = jnp.bfloat16
    act_dtype = bf16 if bf16_act else jnp.float32

    def dense(x, w, b):
        return jnp.dot(x.astype(bf16), w, preferred_element_type=jnp.float32) + b

    x = obs
    for i in (1, 2, 3, 4):
        x = jnp.tanh(dense(x, kparams[f"w{i}"], kparams[f"b{i}"]).astype(act_dtype))
    y = dense(x, kparams["wh"], kparams["bh"])
    t = kparams["scale"] * jnp.tanh(y) + kparams["off"]
    return t[:, :9], t[:, 9:10]


# ----------------------------------------------------------------------------
# Main
# ----------------------------------------------------------------------------
if __name__ == "__main__":
    key = jax.random.PRNGKey(0)
    key, pkey, okey = jax.random.split(key, 3)

    params = init_params(pkey)
    kparams = prepare_params(params)

    batch = 8
    obs = jax.random.normal(okey, (batch, 9), dtype=jnp.float32)

    bf16_act = _use_bf16_activations()
    policy, value = policy_value_forward(obs, kparams, bf16_act=bf16_act)
    (policy, value) = jax.block_until_ready((policy, value))

    assert policy.shape == (batch, 9) and value.shape == (batch, 1)

    # Tight check vs a reference that mirrors the kernel's folded bf16 math.
    tol = 1e-2 if bf16_act else 2e-3
    ref_p_k, ref_v_k = _reference_forward_kernel_math(obs, kparams, bf16_act)
    assert jnp.allclose(policy, ref_p_k, atol=tol, rtol=tol)
    assert jnp.allclose(value, ref_v_k, atol=tol, rtol=tol)

    # Loose check vs the full-f32 PyTorch-semantics reference (bf16 weights).
    ref_p, ref_v = _reference_forward_f32(obs, params)
    assert jnp.allclose(policy, ref_p, atol=5e-2, rtol=5e-2)
    assert jnp.allclose(value, ref_v, atol=5e-2, rtol=5e-2)

    print("KERNEL_OK")
</pallas_src>

<mosaic_0001>
module attributes {stable_mosaic.version = 11 : i64} {
  func.func @_policy_value_kernel(%arg0: i32, %arg1: memref<8x9xf32, #tpu.memory_space<vmem>>, %arg2: memref<9x256xbf16, #tpu.memory_space<vmem>>, %arg3: memref<1x256xf32, #tpu.memory_space<vmem>>, %arg4: memref<256x512xbf16, #tpu.memory_space<vmem>>, %arg5: memref<1x512xf32, #tpu.memory_space<vmem>>, %arg6: memref<512x512xbf16, #tpu.memory_space<vmem>>, %arg7: memref<1x512xf32, #tpu.memory_space<vmem>>, %arg8: memref<512x512xbf16, #tpu.memory_space<vmem>>, %arg9: memref<1x512xf32, #tpu.memory_space<vmem>>, %arg10: memref<512x128xbf16, #tpu.memory_space<vmem>>, %arg11: memref<1x128xf32, #tpu.memory_space<vmem>>, %arg12: memref<1x128xf32, #tpu.memory_space<vmem>>, %arg13: memref<1x128xf32, #tpu.memory_space<vmem>>, %arg14: memref<8x128xf32, #tpu.memory_space<vmem>>) attributes {dimension_semantics = [#tpu.dimension_semantics<parallel>], iteration_bounds = array<i64: 1>, scalar_prefetch = 0 : i64, scratch_operands = 0 : i64, tpu.core_type = #tpu.core_type<tc>, window_params = [{transform_indices = @transform_0, window_bounds = array<i64: 8, 9>}, {pipeline_mode = #tpu.pipeline_mode<synchronous>, transform_indices = @transform_1, window_bounds = array<i64: 9, 256>}, {pipeline_mode = #tpu.pipeline_mode<synchronous>, transform_indices = @transform_2, window_bounds = array<i64: 1, 256>}, {pipeline_mode = #tpu.pipeline_mode<synchronous>, transform_indices = @transform_3, window_bounds = array<i64: 256, 512>}, {pipeline_mode = #tpu.pipeline_mode<synchronous>, transform_indices = @transform_4, window_bounds = array<i64: 1, 512>}, {pipeline_mode = #tpu.pipeline_mode<synchronous>, transform_indices = @transform_5, window_bounds = array<i64: 512, 512>}, {pipeline_mode = #tpu.pipeline_mode<synchronous>, transform_indices = @transform_6, window_bounds = array<i64: 1, 512>}, {pipeline_mode = #tpu.pipeline_mode<synchronous>, transform_indices = @transform_7, window_bounds = array<i64: 512, 512>}, {pipeline_mode = #tpu.pipeline_mode<synchronous>, transform_indices = @transform_8, window_bounds = array<i64: 1, 512>}, {pipeline_mode = #tpu.pipeline_mode<synchronous>, transform_indices = @transform_9, window_bounds = array<i64: 512, 128>}, {pipeline_mode = #tpu.pipeline_mode<synchronous>, transform_indices = @transform_10, window_bounds = array<i64: 1, 128>}, {pipeline_mode = #tpu.pipeline_mode<synchronous>, transform_indices = @transform_11, window_bounds = array<i64: 1, 128>}, {pipeline_mode = #tpu.pipeline_mode<synchronous>, transform_indices = @transform_12, window_bounds = array<i64: 1, 128>}, {transform_indices = @transform_13, window_bounds = array<i64: 8, 128>}]} {
    %c0 = arith.constant 0 : index
    %c0_0 = arith.constant 0 : index
    %0 = vector.load %arg1[%c0, %c0_0] : memref<8x9xf32, #tpu.memory_space<vmem>>, vector<8x9xf32>
    %1 = arith.truncf %0 : vector<8x9xf32> to vector<8x9xbf16>
    %c0_1 = arith.constant 0 : index
    %c0_2 = arith.constant 0 : index
    %2 = vector.load %arg2[%c0_1, %c0_2] : memref<9x256xbf16, #tpu.memory_space<vmem>>, vector<9x256xbf16>
    %cst = arith.constant dense<0.000000e+00> : vector<8x256xf32>
    %3 = tpu.matmul %1, %2, %cst {dimension_numbers = #tpu.dot_dimension_numbers<[1], [0], [0], [1], [0, 0, 1, 1], [], []>} : vector<8x9xbf16>, vector<9x256xbf16>, vector<8x256xf32> -> vector<8x256xf32>
    %c0_3 = arith.constant 0 : index
    %c0_4 = arith.constant 0 : index
    %4 = vector.load %arg3[%c0_3, %c0_4] : memref<1x256xf32, #tpu.memory_space<vmem>>, vector<1x256xf32>
    %5 = vector.broadcast %4 : vector<1x256xf32> to vector<8x256xf32>
    %6 = arith.addf %3, %5 : vector<8x256xf32>
    %7 = math.tanh %6 : vector<8x256xf32>
    %8 = arith.truncf %7 : vector<8x256xf32> to vector<8x256xbf16>
    %c0_5 = arith.constant 0 : index
    %c0_6 = arith.constant 0 : index
    %9 = vector.load %arg4[%c0_5, %c0_6] : memref<256x512xbf16, #tpu.memory_space<vmem>>, vector<256x512xbf16>
    %cst_7 = arith.constant dense<0.000000e+00> : vector<8x512xf32>
    %10 = tpu.matmul %8, %9, %cst_7 {dimension_numbers = #tpu.dot_dimension_numbers<[1], [0], [0], [1], [0, 0, 1, 1], [], []>} : vector<8x256xbf16>, vector<256x512xbf16>, vector<8x512xf32> -> vector<8x512xf32>
    %c0_8 = arith.constant 0 : index
    %c0_9 = arith.constant 0 : index
    %11 = vector.load %arg5[%c0_8, %c0_9] : memref<1x512xf32, #tpu.memory_space<vmem>>, vector<1x512xf32>
    %12 = vector.broadcast %11 : vector<1x512xf32> to vector<8x512xf32>
    %13 = arith.addf %10, %12 : vector<8x512xf32>
    %14 = math.tanh %13 : vector<8x512xf32>
    %15 = arith.truncf %14 : vector<8x512xf32> to vector<8x512xbf16>
    %c0_10 = arith.constant 0 : index
    %c0_11 = arith.constant 0 : index
    %16 = vector.load %arg6[%c0_10, %c0_11] : memref<512x512xbf16, #tpu.memory_space<vmem>>, vector<512x512xbf16>
    %cst_12 = arith.constant dense<0.000000e+00> : vector<8x512xf32>
    %17 = tpu.matmul %15, %16, %cst_12 {dimension_numbers = #tpu.dot_dimension_numbers<[1], [0], [0], [1], [0, 0, 1, 1], [], []>} : vector<8x512xbf16>, vector<512x512xbf16>, vector<8x512xf32> -> vector<8x512xf32>
    %c0_13 = arith.constant 0 : index
    %c0_14 = arith.constant 0 : index
    %18 = vector.load %arg7[%c0_13, %c0_14] : memref<1x512xf32, #tpu.memory_space<vmem>>, vector<1x512xf32>
    %19 = vector.broadcast %18 : vector<1x512xf32> to vector<8x512xf32>
    %20 = arith.addf %17, %19 : vector<8x512xf32>
    %21 = math.tanh %20 : vector<8x512xf32>
    %22 = arith.truncf %21 : vector<8x512xf32> to vector<8x512xbf16>
    %c0_15 = arith.constant 0 : index
    %c0_16 = arith.constant 0 : index
    %23 = vector.load %arg8[%c0_15, %c0_16] : memref<512x512xbf16, #tpu.memory_space<vmem>>, vector<512x512xbf16>
    %cst_17 = arith.constant dense<0.000000e+00> : vector<8x512xf32>
    %24 = tpu.matmul %22, %23, %cst_17 {dimension_numbers = #tpu.dot_dimension_numbers<[1], [0], [0], [1], [0, 0, 1, 1], [], []>} : vector<8x512xbf16>, vector<512x512xbf16>, vector<8x512xf32> -> vector<8x512xf32>
    %c0_18 = arith.constant 0 : index
    %c0_19 = arith.constant 0 : index
    %25 = vector.load %arg9[%c0_18, %c0_19] : memref<1x512xf32, #tpu.memory_space<vmem>>, vector<1x512xf32>
    %26 = vector.broadcast %25 : vector<1x512xf32> to vector<8x512xf32>
    %27 = arith.addf %24, %26 : vector<8x512xf32>
    %28 = math.tanh %27 : vector<8x512xf32>
    %29 = arith.truncf %28 : vector<8x512xf32> to vector<8x512xbf16>
    %c0_20 = arith.constant 0 : index
    %c0_21 = arith.constant 0 : index
    %30 = vector.load %arg10[%c0_20, %c0_21] : memref<512x128xbf16, #tpu.memory_space<vmem>>, vector<512x128xbf16>
    %cst_22 = arith.constant dense<0.000000e+00> : vector<8x128xf32>
    %31 = tpu.matmul %29, %30, %cst_22 {dimension_numbers = #tpu.dot_dimension_numbers<[1], [0], [0], [1], [0, 0, 1, 1], [], []>} : vector<8x512xbf16>, vector<512x128xbf16>, vector<8x128xf32> -> vector<8x128xf32>
    %c0_23 = arith.constant 0 : index
    %c0_24 = arith.constant 0 : index
    %32 = vector.load %arg11[%c0_23, %c0_24] : memref<1x128xf32, #tpu.memory_space<vmem>>, vector<1x128xf32>
    %33 = vector.broadcast %32 : vector<1x128xf32> to vector<8x128xf32>
    %34 = arith.addf %31, %33 : vector<8x128xf32>
    %35 = math.tanh %34 : vector<8x128xf32>
    %c0_25 = arith.constant 0 : index
    %c0_26 = arith.constant 0 : index
    %36 = vector.load %arg12[%c0_25, %c0_26] : memref<1x128xf32, #tpu.memory_space<vmem>>, vector<1x128xf32>
    %37 = vector.broadcast %36 : vector<1x128xf32> to vector<8x128xf32>
    %38 = arith.mulf %37, %35 : vector<8x128xf32>
    %c0_27 = arith.constant 0 : index
    %c0_28 = arith.constant 0 : index
    %39 = vector.load %arg13[%c0_27, %c0_28] : memref<1x128xf32, #tpu.memory_space<vmem>>, vector<1x128xf32>
    %40 = vector.broadcast %39 : vector<1x128xf32> to vector<8x128xf32>
    %41 = arith.addf %38, %40 : vector<8x128xf32>
    %c0_29 = arith.constant 0 : index
    %c0_30 = arith.constant 0 : index
    %42 = vector.load %arg14[%c0_29, %c0_30] : memref<8x128xf32, #tpu.memory_space<vmem>>, vector<8x128xf32>
    tpu.vector_store %arg14[%c0_29, %c0_30], %41 {strides = array<i32>} : memref<8x128xf32, #tpu.memory_space<vmem>>, vector<8x128xf32>,
    return
  }
  func.func @transform_0(%arg0: i32) -> (i32, i32) {
    %c0_i32 = arith.constant 0 : i32
    %c0_i32_0 = arith.constant 0 : i32
    return %arg0, %c0_i32 : i32, i32
  }
  func.func @transform_1(%arg0: i32) -> (i32, i32) {
    %c0_i32 = arith.constant 0 : i32
    %c0_i32_0 = arith.constant 0 : i32
    %c0_i32_1 = arith.constant 0 : i32
    return %c0_i32, %c0_i32_0 : i32, i32
  }
  func.func @transform_2(%arg0: i32) -> (i32, i32) {
    %c0_i32 = arith.constant 0 : i32
    %c0_i32_0 = arith.constant 0 : i32
    %c0_i32_1 = arith.constant 0 : i32
    return %c0_i32, %c0_i32_0 : i32, i32
  }
  func.func @transform_3(%arg0: i32) -> (i32, i32) {
    %c0_i32 = arith.constant 0 : i32
    %c0_i32_0 = arith.constant 0 : i32
    %c0_i32_1 = arith.constant 0 : i32
    return %c0_i32, %c0_i32_0 : i32, i32
  }
  func.func @transform_4(%arg0: i32) -> (i32, i32) {
    %c0_i32 = arith.constant 0 : i32
    %c0_i32_0 = arith.constant 0 : i32
    %c0_i32_1 = arith.constant 0 : i32
    return %c0_i32, %c0_i32_0 : i32, i32
  }
  func.func @transform_5(%arg0: i32) -> (i32, i32) {
    %c0_i32 = arith.constant 0 : i32
    %c0_i32_0 = arith.constant 0 : i32
    %c0_i32_1 = arith.constant 0 : i32
    return %c0_i32, %c0_i32_0 : i32, i32
  }
  func.func @transform_6(%arg0: i32) -> (i32, i32) {
    %c0_i32 = arith.constant 0 : i32
    %c0_i32_0 = arith.constant 0 : i32
    %c0_i32_1 = arith.constant 0 : i32
    return %c0_i32, %c0_i32_0 : i32, i32
  }
  func.func @transform_7(%arg0: i32) -> (i32, i32) {
    %c0_i32 = arith.constant 0 : i32
    %c0_i32_0 = arith.constant 0 : i32
    %c0_i32_1 = arith.constant 0 : i32
    return %c0_i32, %c0_i32_0 : i32, i32
  }
  func.func @transform_8(%arg0: i32) -> (i32, i32) {
    %c0_i32 = arith.constant 0 : i32
    %c0_i32_0 = arith.constant 0 : i32
    %c0_i32_1 = arith.constant 0 : i32
    return %c0_i32, %c0_i32_0 : i32, i32
  }
  func.func @transform_9(%arg0: i32) -> (i32, i32) {
    %c0_i32 = arith.constant 0 : i32
    %c0_i32_0 = arith.constant 0 : i32
    %c0_i32_1 = arith.constant 0 : i32
    return %c0_i32, %c0_i32_0 : i32, i32
  }
  func.func @transform_10(%arg0: i32) -> (i32, i32) {
    %c0_i32 = arith.constant 0 : i32
    %c0_i32_0 = arith.constant 0 : i32
    %c0_i32_1 = arith.constant 0 : i32
    return %c0_i32, %c0_i32_0 : i32, i32
  }
  func.func @transform_11(%arg0: i32) -> (i32, i32) {
    %c0_i32 = arith.constant 0 : i32
    %c0_i32_0 = arith.constant 0 : i32
    %c0_i32_1 = arith.constant 0 : i32
    return %c0_i32, %c0_i32_0 : i32, i32
  }
  func.func @transform_12(%arg0: i32) -> (i32, i32) {
    %c0_i32 = arith.constant 0 : i32
    %c0_i32_0 = arith.constant 0 : i32
    %c0_i32_1 = arith.constant 0 : i32
    return %c0_i32, %c0_i32_0 : i32, i32
  }
  func.func @transform_13(%arg0: i32) -> (i32, i32) {
    %c0_i32 = arith.constant 0 : i32
    %c0_i32_0 = arith.constant 0 : i32
    return %arg0, %c0_i32 : i32, i32
  }
}

</mosaic_0001>

<bundles_post_ra>
// kernel: _forward_padded.1
= control target key start
LH: loop header
LB: loop body
LE: loop exit
PB: predicated region body
PF: predicated region fallthrough
CT: control target
= control target key end

     0   :  { %18 = vsyncpa [#allocation3], 0  ;;  %s4409_s0 = inlined_call_operand.hbm [shape: f32[8,9], index: 0, kind: input, shape index: {}]   ;;  %s4410_s1 = inlined_call_operand.hbm [shape: bf16[9,256], index: 1, kind: input, shape index: {}]   ;;  %s4411_s2 = inlined_call_operand.hbm [shape: f32[1,256], index: 2, kind: input, shape index: {}]   ;;  %s4412_s3 = inlined_call_operand.hbm [shape: bf16[256,512], index: 3, kind: input, shape index: {}]   ;;  %s4413_s4 = inlined_call_operand.hbm [shape: f32[1,512], index: 4, kind: input, shape index: {}]   ;;  %s4414_s5 = inlined_call_operand.hbm [shape: bf16[512,512], index: 5, kind: input, shape index: {}]   ;;  %s4415_s6 = inlined_call_operand.vmem [shape: f32[1,512], index: 6, kind: input, shape index: {}]   ;;  %s4416_s7 = inlined_call_operand.hbm [shape: bf16[512,512], index: 7, kind: input, shape index: {}]   ;;  %s4417_s8 = inlined_call_operand.hbm [shape: f32[1,512], index: 8, kind: input, shape index: {}]   ;;  %s4418_s9 = inlined_call_operand.hbm [shape: bf16[512,128], index: 9, kind: input, shape index: {}]   ;;  %s4419_s10 = inlined_call_operand.vmem [shape: f32[1,128], index: 10, kind: input, shape index: {}]   ;;  %s4420_s11 = inlined_call_operand.vmem [shape: f32[1,128], index: 11, kind: input, shape index: {}]   ;;  %s4421_s12 = inlined_call_operand.vmem [shape: f32[1,128], index: 12, kind: input, shape index: {}]   ;;  %s4422_s13 = inlined_call_operand.hbm [shape: f32[8,128], index: 13, kind: output, shape index: {}]  }
   0x1   :  { %19 = vsyncpa [#allocation6], 0 }
   0x2   :  { %20 = vsyncpa [#allocation9], 0 }
   0x3   :  { %21 = vsyncpa [#allocation12], 0 }
   0x4   :  { %22 = vsyncpa [#allocation15], 0 }
   0x5   :  { %23 = vsyncpa [#allocation4], 0  ;;  %s4220_s25 = smov [#allocation5]  }
   0x6   :  { %s39_s26 = sshll.u32 %s4220_s25, 4  ;;  %s40_s26 = int_to_ptr.vmem [resolvable:$true] %s39_s26 }
   0x7   :  { %s4016_s27 = scalar_lea.vmem %s40_s26, 256  ;;  %p4021_p1 = scmp.lt.s32.totalorder %s40_s26, %s40_s26 }
   0x8   :  { %p4017_p0 = scmp.ne.s32.totalorder %s40_s26, %s4016_s27  ;;  %p4022_p2 = scmp.lt.s32.totalorder %s4016_s27, %s4016_s27 }
   0xa   :  { %p4023_p3 = por %p4022_p2, %p4021_p1 }
   0xc   :  { %p4024_p4 = pnand %p4023_p3, %p4017_p0 }
   0xe   :  { %4027 = shalt.err (!%p4024_p4)
}
   0xf   :  { %s4221_s28 = smov 128   ;;  %s4222_s29 = smov 8  }
  0x10   :  { %45 = dma.hbm_to_vmem [thread:$0]  %s4410_s1, 256, %s40_s26, [#allocation6], %s4221_s28, %s4221_s28, %s4222_s29  }
  0x11   :  { %s4223_s15 = smov [#allocation8]  }
  0x12   :  { %s61_s16 = sshll.u32 %s4223_s15, 4  ;;  %s62_s16 = int_to_ptr.vmem [resolvable:$true] %s61_s16 }
  0x13   :  { %s4036_s17 = scalar_lea.vmem %s62_s16, 8192  ;;  %p4041_p6 = scmp.lt.s32.totalorder %s62_s16, %s62_s16 }
  0x14   :  { %p4037_p5 = scmp.ne.s32.totalorder %s62_s16, %s4036_s17  ;;  %p4042_p7 = scmp.lt.s32.totalorder %s4036_s17, %s4036_s17 }
  0x16   :  { %p4043_p8 = por %p4042_p7, %p4041_p6 }
  0x18   :  { %p4044_p9 = pnand %p4043_p8, %p4037_p5 }
  0x1a   :  { %4047 = shalt.err (!%p4044_p9)
}
  0x1b   :  { %s4224_s18 = smov 256   ;;  %s4225_s19 = smov 16  }
  0x1c   :  { %67 = dma.hbm_to_vmem [thread:$0]  %s4412_s3, 8192, %s62_s16, [#allocation9], %s4224_s18, %s4224_s18, %s4225_s19  }
  0x1d   :  { %s4226_s1 = smov [#allocation11]   ;;  %s4227_s23 = smov [#allocation14]  }
  0x1e   :  { %s83_s22 = sshll.u32 %s4226_s1, 4  ;;  %s110_s24 = sshll.u32 %s4227_s23, 4  ;;  %s84_s22 = int_to_ptr.vmem [resolvable:$true] %s83_s22  ;;  %s111_s24 = int_to_ptr.vmem [resolvable:$true] %s110_s24 }
  0x1f   :  { %s4056_s25 = scalar_lea.vmem %s84_s22, 16384  ;;  %p4061_p11 = scmp.lt.s32.totalorder %s84_s22, %s84_s22 }
  0x20   :  { %p4057_p10 = scmp.ne.s32.totalorder %s84_s22, %s4056_s25  ;;  %p4062_p12 = scmp.lt.s32.totalorder %s4056_s25, %s4056_s25 }
  0x22   :  { %p4063_p13 = por %p4062_p12, %p4061_p11 }
  0x24   :  { %p4064_p0 = pnand %p4063_p13, %p4057_p10 }
  0x26   :  { %4067 = shalt.err (!%p4064_p0)
}
  0x27   :  { %89 = dma.hbm_to_vmem [thread:$0]  %s4414_s5, 16384, %s84_s22, [#allocation12], %s4224_s18, %s4224_s18, %s4225_s19  }
  0x28   :  { %s4076_s3 = scalar_lea.vmem %s111_s24, 64  ;;  %p4081_p2 = scmp.lt.s32.totalorder %s111_s24, %s111_s24 }
  0x29   :  { %p4077_p1 = scmp.ne.s32.totalorder %s111_s24, %s4076_s3  ;;  %p4082_p3 = scmp.lt.s32.totalorder %s4076_s3, %s4076_s3 }
  0x2b   :  { %p4083_p4 = por %p4082_p3, %p4081_p2 }
  0x2d   :  { %p4084_p5 = pnand %p4083_p4, %p4077_p1 }
  0x2f   :  { %4087 = shalt.err (!%p4084_p5)
}
  0x30   :  { %113 = dma.hbm_to_vmem [thread:$0]  %s4417_s8, 64, %s111_s24, [#allocation15]  }
  0x31   :  { %s4228_s30 = smov [#allocation2]   ;;  %s4229_s15 = smov [#allocation7]  }
  0x32   :  { %s30_s14 = sshll.u32 %s4228_s30, 4  ;;  %s52_s16 = sshll.u32 %s4229_s15, 4  ;;  %s31_s14 = int_to_ptr.vmem [resolvable:$true] %s30_s14  ;;  %s53_s16 = int_to_ptr.vmem [resolvable:$true] %s52_s16 }
  0x33   :  { %s4096_s17 = scalar_lea.vmem %s31_s14, 128  ;;  %p4101_p7 = scmp.lt.s32.totalorder %s31_s14, %s31_s14 }
  0x34   :  { %p4097_p6 = scmp.ne.s32.totalorder %s31_s14, %s4096_s17  ;;  %p4102_p8 = scmp.lt.s32.totalorder %s4096_s17, %s4096_s17 }
  0x36   :  { %p4103_p9 = por %p4102_p8, %p4101_p7 }
  0x38   :  { %p4104_p10 = pnand %p4103_p9, %p4097_p6 }
  0x3a   :  { %4107 = shalt.err (!%p4104_p10)
}
  0x3b   :  { %33 = dma.hbm_to_vmem [thread:$0]  %s4409_s0, 128, %s31_s14, [#allocation3]  }
  0x3c   :  { %s4116_s21 = scalar_lea.vmem %s53_s16, 32  ;;  %p4121_p12 = scmp.lt.s32.totalorder %s53_s16, %s53_s16 }
  0x3d   :  { %p4117_p11 = scmp.ne.s32.totalorder %s53_s16, %s4116_s21  ;;  %p4122_p13 = scmp.lt.s32.totalorder %s4116_s21, %s4116_s21 }
  0x3f   :  { %p4123_p0 = por %p4122_p13, %p4121_p12 }
  0x41   :  { %p4124_p1 = pnand %p4123_p0, %p4117_p11 }
  0x43   :  { %4127 = shalt.err (!%p4124_p1)
}
  0x44   :  { %55 = dma.hbm_to_vmem [thread:$0]  %s4411_s2, 32, %s53_s16, [#allocation6]  }
  0x45   :  { %s4230_s22 = smov [#allocation10]   ;;  %s4231_s24 = smov [#allocation13]  }
  0x46   :  { %s74_s23 = sshll.u32 %s4230_s22, 4  ;;  %s97_s25 = sshll.u32 %s4231_s24, 4  ;;  %s75_s23 = int_to_ptr.vmem [resolvable:$true] %s74_s23  ;;  %s98_s25 = int_to_ptr.vmem [resolvable:$true] %s97_s25 }
  0x47   :  { %s4136_s26 = scalar_lea.vmem %s75_s23, 64  ;;  %p4141_p3 = scmp.lt.s32.totalorder %s75_s23, %s75_s23 }
  0x48   :  { %p4137_p2 = scmp.ne.s32.totalorder %s75_s23, %s4136_s26  ;;  %p4142_p4 = scmp.lt.s32.totalorder %s4136_s26, %s4136_s26 }
  0x4a   :  { %p4143_p5 = por %p4142_p4, %p4141_p3 }
  0x4c   :  { %p4144_p6 = pnand %p4143_p5, %p4137_p2 }
  0x4e   :  { %4147 = shalt.err (!%p4144_p6)
}
  0x4f   :  { %77 = dma.hbm_to_vmem [thread:$0]  %s4413_s4, 64, %s75_s23, [#allocation9]  }
  0x50   :  { %s4156_s3 = scalar_lea.vmem %s98_s25, 16384  ;;  %p4161_p8 = scmp.lt.s32.totalorder %s98_s25, %s98_s25 }
  0x51   :  { %p4157_p7 = scmp.ne.s32.totalorder %s98_s25, %s4156_s3  ;;  %p4162_p9 = scmp.lt.s32.totalorder %s4156_s3, %s4156_s3 }
  0x53   :  { %p4163_p10 = por %p4162_p9, %p4161_p8 }
  0x55   :  { %p4164_p11 = pnand %p4163_p10, %p4157_p7 }
  0x57   :  { %4167 = shalt.err (!%p4164_p11)
}
  0x58   :  { %103 = dma.hbm_to_vmem [thread:$0]  %s4416_s7, 16384, %s98_s25, [#allocation12], %s4224_s18, %s4224_s18, %s4225_s19  }
  0x59   :  { %s4232_s29 = smov [#allocation16]  }
  0x5a   :  { %s119_s30 = sshll.u32 %s4232_s29, 4  ;;  %s120_s30 = int_to_ptr.vmem [resolvable:$true] %s119_s30 }
  0x5b   :  { %s4176_s14 = scalar_lea.vmem %s120_s30, 4096  ;;  %p4181_p13 = scmp.lt.s32.totalorder %s120_s30, %s120_s30 }
  0x5c   :  { %p4177_p12 = scmp.ne.s32.totalorder %s120_s30, %s4176_s14  ;;  %p4182_p0 = scmp.lt.s32.totalorder %s4176_s14, %s4176_s14 }
  0x5e   :  { %p4183_p1 = por %p4182_p0, %p4181_p13 }
  0x60   :  { %p4184_p2 = pnand %p4183_p1, %p4177_p12 }
  0x62   :  { %4187 = shalt.err (!%p4184_p2)
}
  0x63   :  { %s4233_s4 = smov 64   ;;  %s4234_s15 = smov 4  }
  0x64   :  { %125 = dma.hbm_to_vmem [thread:$0]  %s4418_s9, 4096, %s120_s30, [#allocation15], %s4233_s4, %s4233_s4, %s4234_s15  }
  0x65   :  { %4208 = dma.done.wait [#allocation3], 128  }
  0x66   :  { %4209 = vsyncadd [#allocation3], 4294967168 }
  0x67   :  { %4210 = dma.done.wait [#allocation6], 288  }
  0x68   :  { %4211 = vsyncadd [#allocation6], 4294967008 }
  0x69   :  { %4212 = dma.done.wait [#allocation9], 8256  }
  0x6a   :  { %4213 = vsyncadd [#allocation9], 4294959040 }
  0x6b   :  { %4214 = dma.done.wait [#allocation12], 32768  }
  0x6c   :  { %4215 = vsyncadd [#allocation12], 4294934528 }
  0x6d   :  { %4216 = dma.done.wait [#allocation15], 4160  }
  0x6e   :  { %4217 = vsyncadd [#allocation15], 4294963136  ;;  %vm188_vm0 = vcmask 1043456   ;;  %v4235_v0 = vmov 0   ;;  %vm189_vm1 = vcmask 1044480   ;;  %v4236_v1 = vmov 65535  }
  0x6f   :  { %230 = vmatprep.mubr.bf16.mxu0 %v4235_v0  ;;  %v190_v2 = vsel %vm188_vm0, 4294967295, %v4236_v1  ;;  %v3463_v4 = vld [vmem:[#allocation5 + $0x4] ss:$8 sps:$4 sm:$0x1f]   ;;  %v160_v6 = vld [vmem:[#allocation2] sm:$0xff]  ;;  %vm184_vm2 = vcmask 72704  }
  0x70   :  { %v191_v3 = vsel %vm189_vm1, %v190_v2, 0  ;;  %v3465_v5 = vld [vmem:[#allocation5] ss:$8 sps:$4 sm:$0x1f]   ;;  %v3468_v10 = vld [vmem:[#allocation8 + $0xe8] ss:$16 sps:$4 sm:$0xff]   ;;  %v161_v12 = vpack.c.bf16 %v160_v6, %v160_v6 }
  0x71   :  { %v196_v7 = vand.u32 %v3463_v4, %v191_v3  ;;  %v3466_v8 = vld [vmem:[#allocation8 + $0xe4] ss:$16 sps:$4 sm:$0xff]   ;;  %v193_v9 = vand.u32 %v3465_v5, %v191_v3  ;;  %v3470_v11 = vld [vmem:[#allocation8 + $0xec] ss:$16 sps:$4 sm:$0xff]   ;;  %v3471_v13 = vld [vmem:[#allocation8 + $0xe0] ss:$16 sps:$4 sm:$0xff]  }
  0x72   :  { %649 = vmatprep.subr.bf16.mxu1 %v3466_v8  ;;  %v3472_v14 = vld [vmem:[#allocation8 + $0xc4] ss:$16 sps:$4 sm:$0xff]   ;;  %v3476_v15 = vld [vmem:[#allocation8 + $0xcc] ss:$16 sps:$4 sm:$0xff]   ;;  %v3477_v16 = vld [vmem:[#allocation8 + $0xc0] ss:$16 sps:$4 sm:$0xff]  }
  0x73   :  { %212 = vmatprep.subr.bf16.mxu0 %v196_v7  ;;  %650 = vmatpush1.bf16.msra.mxu1 %v3471_v13  ;;  %v3478_v17 = vld [vmem:[#allocation8 + $0xa4] ss:$16 sps:$4 sm:$0xff]   ;;  %v3474_v18 = vld [vmem:[#allocation8 + $0xc8] ss:$16 sps:$4 sm:$0xff]   ;;  %v3482_v19 = vld [vmem:[#allocation8 + $0xac] ss:$16 sps:$4 sm:$0xff]  }
  0x74   :  { %213 = vmatpush1.bf16.msra.mxu0 %v193_v9  ;;  %651 = vmatprep.subr.bf16.mxu1 %v3472_v14  ;;  %v3483_v20 = vld [vmem:[#allocation8 + $0xa0] ss:$16 sps:$4 sm:$0xff]   ;;  %v3484_v21 = vld [vmem:[#allocation8 + $0x84] ss:$16 sps:$4 sm:$0xff]   ;;  %v3480_v22 = vld [vmem:[#allocation8 + $0xa8] ss:$16 sps:$4 sm:$0xff]  }
  0x75   :  { %690 = vmatprep.subr.bf16.mxu0 %v3470_v11  ;;  %v3488_v23 = vld [vmem:[#allocation8 + $0x8c] ss:$16 sps:$4 sm:$0xff]   ;;  %v3489_v24 = vld [vmem:[#allocation8 + $0x80] ss:$16 sps:$4 sm:$0xff]   ;;  %v3490_v25 = vld [vmem:[#allocation8 + $0x64] ss:$16 sps:$4 sm:$0xff]  }
  0x76   :  { %v3486_v26 = vld [vmem:[#allocation8 + $0x88] ss:$16 sps:$4 sm:$0xff]   ;;  %v3494_v27 = vld [vmem:[#allocation8 + $0x6c] ss:$16 sps:$4 sm:$0xff]   ;;  %v3495_v28 = vld [vmem:[#allocation8 + $0x60] ss:$16 sps:$4 sm:$0xff]  }
  0x77   :  { %3045 = vmatmul.mubr.msk.bf16.vlgmr.msra.gmra.mxu0 %vm184_vm2, %v161_v12  ;;  %652 = vmatpush1.bf16.msra.mxu1 %v3477_v16  ;;  %v3496_v29 = vld [vmem:[#allocation8 + $0x44] ss:$16 sps:$4 sm:$0xff]   ;;  %v3492_v30 = vld [vmem:[#allocation8 + $0x68] ss:$16 sps:$4 sm:$0xff]   ;;  %v3500_v31 = vld [vmem:[#allocation8 + $0x4c] ss:$16 sps:$4 sm:$0xff]   ;;  %v166_v12 = vlaneseq }
  0x78   :  { %691 = vmatpush1.bf16.msra.mxu0 %v3468_v10  ;;  %653 = vmatprep.subr.bf16.mxu1 %v3478_v17  ;;  %v3501_v32 = vld [vmem:[#allocation8 + $0x40] ss:$16 sps:$4 sm:$0xff]   ;;  %v3502_v33 = vld [vmem:[#allocation8 + $0x24] ss:$16 sps:$4 sm:$0xff]   ;;  %v3498_v34 = vld [vmem:[#allocation8 + $0x48] ss:$16 sps:$4 sm:$0xff]  }
  0x79   :  { %692 = vmatprep.subr.bf16.mxu0 %v3476_v15  ;;  %v3506_v35 = vld [vmem:[#allocation8 + $0x2c] ss:$16 sps:$4 sm:$0xff]   ;;  %v3507_v36 = vld [vmem:[#allocation8 + $0x20] ss:$16 sps:$4 sm:$0xff]   ;;  %v3508_v37 = vld [vmem:[#allocation8 + $0x4] ss:$16 sps:$4 sm:$0xff]  }
  0x7a   :  { %v3504_v38 = vld [vmem:[#allocation8 + $0x28] ss:$16 sps:$4 sm:$0xff]   ;;  %v3512_v39 = vld [vmem:[#allocation8 + $0xc] ss:$16 sps:$4 sm:$0xff]   ;;  %v3513_v40 = vld [vmem:[#allocation8] ss:$16 sps:$4 sm:$0xff]  }
  0x7b   :  { %654 = vmatpush1.bf16.msra.mxu1 %v3483_v20  ;;  %v3510_v41 = vld [vmem:[#allocation8 + $0x8] ss:$16 sps:$4 sm:$0xff]   ;;  %v3514_v42 = vld [vmem:[#allocation8 + $0x1e4] ss:$16 sps:$4 sm:$0xff]   ;;  %v3518_v43 = vld [vmem:[#allocation8 + $0x1ec] ss:$16 sps:$4 sm:$0xff]  }
  0x7c   :  { %693 = vmatpush1.bf16.msra.mxu0 %v3474_v18  ;;  %655 = vmatprep.subr.bf16.mxu1 %v3484_v21  ;;  %v3519_v44 = vld [vmem:[#allocation8 + $0x1e0] ss:$16 sps:$4 sm:$0xff]   ;;  %v3520_v45 = vld [vmem:[#allocation8 + $0x1c4] ss:$16 sps:$4 sm:$0xff]   ;;  %v3516_v46 = vld [vmem:[#allocation8 + $0x1e8] ss:$16 sps:$4 sm:$0xff]  }
  0x7d   :  { %694 = vmatprep.subr.bf16.mxu0 %v3482_v19  ;;  %v3524_v47 = vld [vmem:[#allocation8 + $0x1cc] ss:$16 sps:$4 sm:$0xff]   ;;  %v3525_v48 = vld [vmem:[#allocation8 + $0x1c0] ss:$16 sps:$4 sm:$0xff]   ;;  %v3526_v49 = vld [vmem:[#allocation8 + $0x1a4] ss:$16 sps:$4 sm:$0xff]  }
  0x7e   :  { %v3522_v50 = vld [vmem:[#allocation8 + $0x1c8] ss:$16 sps:$4 sm:$0xff]   ;;  %v3530_v51 = vld [vmem:[#allocation8 + $0x1ac] ss:$16 sps:$4 sm:$0xff]   ;;  %v3531_v52 = vld [vmem:[#allocation8 + $0x1a0] ss:$16 sps:$4 sm:$0xff]  }
  0x7f   :  { %656 = vmatpush1.bf16.msra.mxu1 %v3489_v24  ;;  %v3528_v53 = vld [vmem:[#allocation8 + $0x1a8] ss:$16 sps:$4 sm:$0xff]   ;;  %v3532_v54 = vld [vmem:[#allocation8 + $0x184] ss:$16 sps:$4 sm:$0xff]   ;;  %v3536_v55 = vld [vmem:[#allocation8 + $0x18c] ss:$16 sps:$4 sm:$0xff]  }
  0x80   :  { %695 = vmatpush1.bf16.msra.mxu0 %v3480_v22  ;;  %657 = vmatprep.subr.bf16.mxu1 %v3490_v25  ;;  %v3534_v56 = vld [vmem:[#allocation8 + $0x188] ss:$16 sps:$4 sm:$0xff]   ;;  %v3537_v57 = vld [vmem:[#allocation8 + $0x180] ss:$16 sps:$4 sm:$0xff]   ;;  %v3538_v58 = vld [vmem:[#allocation8 + $0x164] ss:$16 sps:$4 sm:$0xff]  }
  0x81   :  { %696 = vmatprep.subr.bf16.mxu0 %v3488_v23  ;;  %v3542_v59 = vld [vmem:[#allocation8 + $0x16c] ss:$16 sps:$4 sm:$0xff]   ;;  %v3540_v60 = vld [vmem:[#allocation8 + $0x168] ss:$16 sps:$4 sm:$0xff]   ;;  %v3543_v61 = vld [vmem:[#allocation8 + $0x160] ss:$16 sps:$4 sm:$0xff]  }
  0x82   :  { %v3544_v62 = vld [vmem:[#allocation8 + $0x144] ss:$16 sps:$4 sm:$0xff]   ;;  %v3548_v63 = vld [vmem:[#allocation8 + $0x14c] ss:$16 sps:$4 sm:$0xff]   ;;  %v3546_v0 = vld [vmem:[#allocation8 + $0x148] ss:$16 sps:$4 sm:$0xff]  }
  0x83   :  { %658 = vmatpush1.bf16.msra.mxu1 %v3495_v28  ;;  %v3549_v1 = vld [vmem:[#allocation8 + $0x140] ss:$16 sps:$4 sm:$0xff]   ;;  %v3550_v2 = vld [vmem:[#allocation8 + $0x124] ss:$16 sps:$4 sm:$0xff]   ;;  %v3554_v3 = vld [vmem:[#allocation8 + $0x12c] ss:$16 sps:$4 sm:$0xff]  }
  0x84   :  { %697 = vmatpush1.bf16.msra.mxu0 %v3486_v26  ;;  %659 = vmatprep.subr.bf16.mxu1 %v3496_v29  ;;  %v3552_v4 = vld [vmem:[#allocation8 + $0x128] ss:$16 sps:$4 sm:$0xff]   ;;  %v3555_v5 = vld [vmem:[#allocation8 + $0x120] ss:$16 sps:$4 sm:$0xff]   ;;  %v3556_v6 = vld [vmem:[#allocation8 + $0x104] ss:$16 sps:$4 sm:$0xff]  }
  0x85   :  { %698 = vmatprep.subr.bf16.mxu0 %v3494_v27  ;;  %v3560_v7 = vld [vmem:[#allocation8 + $0x10c] ss:$16 sps:$4 sm:$0xff]   ;;  %v3558_v8 = vld [vmem:[#allocation8 + $0x108] ss:$16 sps:$4 sm:$0xff]   ;;  %v3561_v9 = vld [vmem:[#allocation8 + $0x100] ss:$16 sps:$4 sm:$0xff]  }
  0x86   :  { %v3564_v10 = vld [vmem:[#allocation11 + $0xe4] ss:$16 sps:$4 sm:$0xff]   ;;  %v4344_v13 = vshrl.u32 %v166_v12, 7  ;;  %v164_v15 = vld [vmem:[#allocation7] sm:$0x3]  ;;  %s4237_s8 = smov [#allocation17]  }
  0x87   :  { %660 = vmatpush1.bf16.msra.mxu1 %v3501_v32  ;;  %v3567_v11 = vld [vmem:[#allocation11 + $0x2e4] ss:$16 sps:$4 sm:$0xff]   ;;  %v3562_v28 = vld [vmem:[#allocation11 + $0xe0] ss:$16 sps:$4 sm:$0xff]   ;;  %s3030_s1 = sshll.u32 %s4237_s8, 4  ;;  %s3031_s1 = int_to_ptr.vmem [resolvable:$true] %s3030_s1 }
  0x88   :  { %699 = vmatpush1.bf16.msra.mxu0 %v3492_v30  ;;  %661 = vmatprep.subr.bf16.mxu1 %v3502_v33  ;;  %v4347_v14 = vsub.s32 0, %v4344_v13  ;;  %v4350_v16 = vsub.s32 1, %v4344_v13  ;;  %v3565_v29 = vld [vmem:[#allocation11 + $0x2e0] ss:$16 sps:$4 sm:$0xff]   ;;  %v3573_v32 = vld [vmem:[#allocation11 + $0x2c4] ss:$16 sps:$4 sm:$0xff]   ;;  %p4193_p4 = scmp.lt.s32.totalorder %s3031_s1, %s3031_s1 }
  0x89   :  { %700 = vmatprep.subr.bf16.mxu0 %v3500_v31  ;;  %v3570_v31 = vld [vmem:[#allocation11 + $0xc4] ss:$16 sps:$4 sm:$0xff]   ;;  %v3568_v33 = vld [vmem:[#allocation11 + $0xc0] ss:$16 sps:$4 sm:$0xff]  }
  0x8a   :  { %v169_v17 = vrot.slane %v164_v15, %v4347_v14  ;;  %v173_v18 = vrot.slane %v164_v15, %v4350_v16  ;;  %v3639_v12 = vld [vmem:[#allocation11 + $0x364] ss:$16 sps:$4 sm:$0xff]   ;;  %v3634_v15 = vld [vmem:[#allocation11 + $0x160] ss:$16 sps:$4 sm:$0xff]  }
  0x8b   :  { %662 = vmatpush1.bf16.msra.mxu1 %v3507_v36  ;;  %v3579_v36 = vld [vmem:[#allocation11 + $0x2a4] ss:$16 sps:$4 sm:$0xff]  }
  0x8c   :  { %701 = vmatpush1.bf16.msra.mxu0 %v3498_v34  ;;  %663 = vmatprep.subr.bf16.mxu1 %v3508_v37  ;;  %v3571_v34 = vld [vmem:[#allocation11 + $0x2c0] ss:$16 sps:$4 sm:$0xff]  }
  0x8d   :  { %702 = vmatprep.subr.bf16.mxu0 %v3506_v35  ;;  %v3576_v35 = vld [vmem:[#allocation11 + $0xa4] ss:$16 sps:$4 sm:$0xff]   ;;  %v3574_v37 = vld [vmem:[#allocation11 + $0xa0] ss:$16 sps:$4 sm:$0xff]  }
  0x8f   :  { %664 = vmatpush1.bf16.msra.mxu1 %v3513_v40  ;;  %v3585_v40 = vld [vmem:[#allocation11 + $0x284] ss:$16 sps:$4 sm:$0xff]  }
  0x90   :  { %703 = vmatpush1.bf16.msra.mxu0 %v3504_v38  ;;  %665 = vmatprep.subr.bf16.mxu1 %v3514_v42  ;;  %v3577_v38 = vld [vmem:[#allocation11 + $0x2a0] ss:$16 sps:$4 sm:$0xff]  }
  0x91   :  { %704 = vmatprep.subr.bf16.mxu0 %v3512_v39  ;;  %v3582_v39 = vld [vmem:[#allocation11 + $0x84] ss:$16 sps:$4 sm:$0xff]   ;;  %v3583_v42 = vld [vmem:[#allocation11 + $0x280] ss:$16 sps:$4 sm:$0xff]  }
  0x93   :  { %666 = vmatpush2.bf16.msra.mxu1 %v3519_v44  ;;  %v3591_v44 = vld [vmem:[#allocation11 + $0x264] ss:$16 sps:$4 sm:$0xff]  }
  0x94   :  { %705 = vmatpush1.bf16.msra.mxu0 %v3510_v41  ;;  %667 = vmatprep.subr.bf16.mxu1 %v3520_v45  ;;  %v3580_v41 = vld [vmem:[#allocation11 + $0x80] ss:$16 sps:$4 sm:$0xff]  }
  0x95   :  { %706 = vmatprep.subr.bf16.mxu0 %v3518_v43  ;;  %v3588_v43 = vld [vmem:[#allocation11 + $0x64] ss:$16 sps:$4 sm:$0xff]   ;;  %v3586_v45 = vld [vmem:[#allocation11 + $0x60] ss:$16 sps:$4 sm:$0xff]  }
  0x97   :  { %668 = vmatpush2.bf16.msra.mxu1 %v3525_v48  ;;  %v3597_v48 = vld [vmem:[#allocation11 + $0x244] ss:$16 sps:$4 sm:$0xff]  }
  0x98   :  { %707 = vmatpush2.bf16.msra.mxu0 %v3516_v46  ;;  %669 = vmatprep.subr.bf16.mxu1 %v3526_v49  ;;  %v3589_v46 = vld [vmem:[#allocation11 + $0x260] ss:$16 sps:$4 sm:$0xff]  }
  0x99   :  { %708 = vmatprep.subr.bf16.mxu0 %v3524_v47  ;;  %v3594_v47 = vld [vmem:[#allocation11 + $0x44] ss:$16 sps:$4 sm:$0xff]   ;;  %v3592_v49 = vld [vmem:[#allocation11 + $0x40] ss:$16 sps:$4 sm:$0xff]  }
  0x9b   :  { %670 = vmatpush2.bf16.msra.mxu1 %v3531_v52  ;;  %v3603_v52 = vld [vmem:[#allocation11 + $0x224] ss:$16 sps:$4 sm:$0xff]  }
  0x9c   :  { %709 = vmatpush2.bf16.msra.mxu0 %v3522_v50  ;;  %671 = vmatprep.subr.bf16.mxu1 %v3532_v54  ;;  %v3595_v50 = vld [vmem:[#allocation11 + $0x240] ss:$16 sps:$4 sm:$0xff]  }
  0x9d   :  { %710 = vmatprep.subr.bf16.mxu0 %v3530_v51  ;;  %v3600_v51 = vld [vmem:[#allocation11 + $0x24] ss:$16 sps:$4 sm:$0xff]   ;;  %v3601_v54 = vld [vmem:[#allocation11 + $0x220] ss:$16 sps:$4 sm:$0xff]  }
  0x9f   :  { %672 = vmatpush2.bf16.msra.mxu1 %v3537_v57  ;;  %v3604_v57 = vld [vmem:[#allocation11] ss:$16 sps:$4 sm:$0xff]  }
  0xa0   :  { %711 = vmatpush2.bf16.msra.mxu0 %v3528_v53  ;;  %673 = vmatprep.subr.bf16.mxu1 %v3538_v58  ;;  %v3598_v53 = vld [vmem:[#allocation11 + $0x20] ss:$16 sps:$4 sm:$0xff]  }
  0xa1   :  { %712 = vmatprep.subr.bf16.mxu0 %v3536_v55  ;;  %v3606_v55 = vld [vmem:[#allocation11 + $0x4] ss:$16 sps:$4 sm:$0xff]   ;;  %v3607_v58 = vld [vmem:[#allocation11 + $0x200] ss:$16 sps:$4 sm:$0xff]  }
  0xa3   :  { %674 = vmatpush2.bf16.msra.mxu1 %v3543_v61  ;;  %v3610_v61 = vld [vmem:[#allocation11 + $0x1e0] ss:$16 sps:$4 sm:$0xff]  }
  0xa4   :  { %713 = vmatpush2.bf16.msra.mxu0 %v3534_v56  ;;  %675 = vmatprep.subr.bf16.mxu1 %v3544_v62  ;;  %v3609_v56 = vld [vmem:[#allocation11 + $0x204] ss:$16 sps:$4 sm:$0xff]   ;;  %v3613_v62 = vld [vmem:[#allocation11 + $0x3e0] ss:$16 sps:$4 sm:$0xff]  }
  0xa5   :  { %714 = vmatprep.subr.bf16.mxu0 %v3542_v59  ;;  %v3612_v59 = vld [vmem:[#allocation11 + $0x1e4] ss:$16 sps:$4 sm:$0xff]  }
  0xa7   :  { %676 = vmatpush2.bf16.msra.mxu1 %v3549_v1  ;;  %v3616_v1 = vld [vmem:[#allocation11 + $0x1c0] ss:$16 sps:$4 sm:$0xff]  }
  0xa8   :  { %715 = vmatpush2.bf16.msra.mxu0 %v3540_v60  ;;  %677 = vmatprep.subr.bf16.mxu1 %v3550_v2  ;;  %v3615_v60 = vld [vmem:[#allocation11 + $0x3e4] ss:$16 sps:$4 sm:$0xff]   ;;  %v3619_v2 = vld [vmem:[#allocation11 + $0x3c0] ss:$16 sps:$4 sm:$0xff]  }
  0xa9   :  { %716 = vmatprep.subr.bf16.mxu0 %v3548_v63  ;;  %v3618_v63 = vld [vmem:[#allocation11 + $0x1c4] ss:$16 sps:$4 sm:$0xff]  }
  0xab   :  { %678 = vmatpush2.bf16.msra.mxu1 %v3555_v5  ;;  %v3622_v5 = vld [vmem:[#allocation11 + $0x1a0] ss:$16 sps:$4 sm:$0xff]  }
  0xac   :  { %717 = vmatpush2.bf16.msra.mxu0 %v3546_v0  ;;  %679 = vmatprep.subr.bf16.mxu1 %v3556_v6  ;;  %v3621_v0 = vld [vmem:[#allocation11 + $0x3c4] ss:$16 sps:$4 sm:$0xff]   ;;  %v3625_v6 = vld [vmem:[#allocation11 + $0x3a0] ss:$16 sps:$4 sm:$0xff]  }
  0xad   :  { %718 = vmatprep.subr.bf16.mxu0 %v3554_v3  ;;  %v3624_v3 = vld [vmem:[#allocation11 + $0x1a4] ss:$16 sps:$4 sm:$0xff]  }
  0xaf   :  { %680 = vmatpush2.bf16.msra.mxu1 %v3561_v9  ;;  %v3628_v9 = vld [vmem:[#allocation11 + $0x180] ss:$16 sps:$4 sm:$0xff]  }
  0xb0   :  { %719 = vmatpush2.bf16.msra.mxu0 %v3552_v4  ;;  %1529 = vmatprep.subr.bf16.mxu1 %v3564_v10  ;;  %v3627_v4 = vld [vmem:[#allocation11 + $0x3a4] ss:$16 sps:$4 sm:$0xff]   ;;  %v3631_v10 = vld [vmem:[#allocation11 + $0x380] ss:$16 sps:$4 sm:$0xff]  }
  0xb1   :  { %720 = vmatprep.subr.bf16.mxu0 %v3560_v7  ;;  %v3630_v7 = vld [vmem:[#allocation11 + $0x184] ss:$16 sps:$4 sm:$0xff]  }
  0xb4   :  { %721 = vmatpush2.bf16.msra.mxu0 %v3558_v8  ;;  %v3633_v8 = vld [vmem:[#allocation11 + $0x384] ss:$16 sps:$4 sm:$0xff]  }
  0xb5   :  { %1570 = vmatprep.subr.bf16.mxu0 %v3567_v11  ;;  %v3636_v11 = vld [vmem:[#allocation11 + $0x164] ss:$16 sps:$4 sm:$0xff]  }
 0x137   :  { %v232_v19 = vpop.f32.mrf.mxu0 }
 0x138   :  { %v233_v20 = vadd.f32 %v232_v19, %v169_v17  ;;  %v3637_v17 = vld [vmem:[#allocation11 + $0x360] ss:$16 sps:$4 sm:$0xff]   ;;  %v3645_v19 = vld [vmem:[#allocation11 + $0x344] ss:$16 sps:$4 sm:$0xff]  }
 0x139   :  { %v234_v21 = vpop.f32.mrf.mxu0 }
 0x13a   :  { %v235_v22 = vadd.f32 %v234_v21, %v173_v18  ;;  %3978 = vtanh.f32 %v233_v20  ;;  %v3642_v18 = vld [vmem:[#allocation11 + $0x144] ss:$16 sps:$4 sm:$0xff]   ;;  %v3640_v20 = vld [vmem:[#allocation11 + $0x140] ss:$16 sps:$4 sm:$0xff]  }
 0x13b   :  { %v236_v23 = vpop.f32.mrf.mxu0  ;;  %v3643_v21 = vld [vmem:[#allocation11 + $0x340] ss:$16 sps:$4 sm:$0xff]  }
 0x13c   :  { %3980 = vtanh.f32 %v235_v22  ;;  %v3648_v22 = vld [vmem:[#allocation11 + $0x124] ss:$16 sps:$4 sm:$0xff]  }
 0x13d   :  { %v237_v24 = vpop.f32.mrf.mxu0  ;;  %v3651_v23 = vld [vmem:[#allocation11 + $0x324] ss:$16 sps:$4 sm:$0xff]  }
 0x13e   :  { %v3646_v24 = vld [vmem:[#allocation11 + $0x120] ss:$16 sps:$4 sm:$0xff]  }
 0x147   :  { %v3979_v25 = vpop.eup %3978 }
 0x148   :  { %v241_v30 = vpack.c.bf16 %v3979_v25, %v3979_v25  ;;  %v3649_v25 = vld [vmem:[#allocation11 + $0x320] ss:$16 sps:$4 sm:$0xff]  }
 0x149   :  { %v3981_v26 = vpop.eup %3980 }
 0x14a   :  { %v242_v27 = vpack.c.bf16 %v3981_v26, %v3981_v26  ;;  %v3654_v26 = vld [vmem:[#allocation11 + $0x104] ss:$16 sps:$4 sm:$0xff]  }
 0x14c   :  { %681 = vmatprep.mubr.bf16.mxu1 %v242_v27  ;;  %722 = vmatprep.mubr.bf16.mxu0 %v242_v27  ;;  %v3657_v27 = vld [vmem:[#allocation11 + $0x304] ss:$16 sps:$4 sm:$0xff]  }
 0x14d   :  { %682 = vmatmul.mubr.bf16.vlgmr.msra.gmra.mxu1 %v241_v30  ;;  %723 = vmatmul.mubr.bf16.vlgmr.msra.gmra.mxu0 %v241_v30  ;;  %v3660_v30 = vld [vmem:[#allocation11 + $0xec] ss:$16 sps:$4 sm:$0xff]  }
 0x14e   :  { %1530 = vmatpush1.bf16.msra.mxu1 %v3562_v28  ;;  %1571 = vmatpush1.bf16.msra.mxu0 %v3565_v29  ;;  %v3652_v28 = vld [vmem:[#allocation11 + $0x100] ss:$16 sps:$4 sm:$0xff]  }
 0x14f   :  { %1531 = vmatprep.subr.bf16.mxu1 %v3570_v31  ;;  %1572 = vmatprep.subr.bf16.mxu0 %v3573_v32  ;;  %v3655_v29 = vld [vmem:[#allocation11 + $0x300] ss:$16 sps:$4 sm:$0xff]   ;;  %v3663_v31 = vld [vmem:[#allocation11 + $0x2ec] ss:$16 sps:$4 sm:$0xff]   ;;  %v4355_v32 = vsub.s32 2, %v4344_v13 }
 0x152   :  { %1532 = vmatpush1.bf16.msra.mxu1 %v3568_v33  ;;  %1573 = vmatpush1.bf16.msra.mxu0 %v3571_v34  ;;  %v307_v33 = vld [vmem:[#allocation10] sm:$0xf]  ;;  %v4358_v34 = vsub.s32 3, %v4344_v13 }
 0x153   :  { %1533 = vmatprep.subr.bf16.mxu1 %v3576_v35  ;;  %1574 = vmatprep.subr.bf16.mxu0 %v3579_v36  ;;  %v312_v35 = vrot.slane %v307_v33, %v4347_v14  ;;  %v320_v36 = vrot.slane %v307_v33, %v4355_v32 }
 0x156   :  { %1534 = vmatpush1.bf16.msra.mxu1 %v3574_v37  ;;  %1575 = vmatpush1.bf16.msra.mxu0 %v3577_v38  ;;  %v316_v37 = vrot.slane %v307_v33, %v4350_v16  ;;  %v324_v38 = vrot.slane %v307_v33, %v4358_v34  ;;  %v3717_v33 = vld [vmem:[#allocation11 + $0x3cc] ss:$16 sps:$4 sm:$0xff]  }
 0x157   :  { %1535 = vmatprep.subr.bf16.mxu1 %v3582_v39  ;;  %1576 = vmatprep.subr.bf16.mxu0 %v3585_v40 }
 0x15a   :  { %1536 = vmatpush1.bf16.msra.mxu1 %v3580_v41  ;;  %1577 = vmatpush1.bf16.msra.mxu0 %v3583_v42 }
 0x15b   :  { %1537 = vmatprep.subr.bf16.mxu1 %v3588_v43  ;;  %1578 = vmatprep.subr.bf16.mxu0 %v3591_v44 }
 0x15e   :  { %1538 = vmatpush1.bf16.msra.mxu1 %v3586_v45  ;;  %1579 = vmatpush1.bf16.msra.mxu0 %v3589_v46 }
 0x15f   :  { %1539 = vmatprep.subr.bf16.mxu1 %v3594_v47  ;;  %1580 = vmatprep.subr.bf16.mxu0 %v3597_v48 }
 0x162   :  { %1540 = vmatpush1.bf16.msra.mxu1 %v3592_v49  ;;  %1581 = vmatpush1.bf16.msra.mxu0 %v3595_v50 }
 0x163   :  { %1541 = vmatprep.subr.bf16.mxu1 %v3600_v51  ;;  %1582 = vmatprep.subr.bf16.mxu0 %v3603_v52 }
 0x166   :  { %1542 = vmatpush1.bf16.msra.mxu1 %v3598_v53  ;;  %1583 = vmatpush1.bf16.msra.mxu0 %v3601_v54 }
 0x167   :  { %1543 = vmatprep.subr.bf16.mxu1 %v3606_v55  ;;  %1584 = vmatprep.subr.bf16.mxu0 %v3609_v56  ;;  %v3658_v55 = vld [vmem:[#allocation11 + $0xe8] ss:$16 sps:$4 sm:$0xff]  }
 0x16a   :  { %1544 = vmatpush1.bf16.msra.mxu1 %v3604_v57  ;;  %1585 = vmatpush1.bf16.msra.mxu0 %v3607_v58  ;;  %v3661_v58 = vld [vmem:[#allocation11 + $0x2e8] ss:$16 sps:$4 sm:$0xff]  }
 0x16b   :  { %1545 = vmatprep.subr.bf16.mxu1 %v3612_v59  ;;  %1586 = vmatprep.subr.bf16.mxu0 %v3615_v60  ;;  %v3666_v60 = vld [vmem:[#allocation11 + $0xcc] ss:$16 sps:$4 sm:$0xff]  }
 0x16e   :  { %1546 = vmatpush2.bf16.msra.mxu1 %v3610_v61  ;;  %1587 = vmatpush2.bf16.msra.mxu0 %v3613_v62  ;;  %v3669_v61 = vld [vmem:[#allocation11 + $0x2cc] ss:$16 sps:$4 sm:$0xff]   ;;  %v3664_v62 = vld [vmem:[#allocation11 + $0xc8] ss:$16 sps:$4 sm:$0xff]  }
 0x16f   :  { %1547 = vmatprep.subr.bf16.mxu1 %v3618_v63  ;;  %1588 = vmatprep.subr.bf16.mxu0 %v3621_v0  ;;  %v3667_v63 = vld [vmem:[#allocation11 + $0x2c8] ss:$16 sps:$4 sm:$0xff]   ;;  %v3672_v0 = vld [vmem:[#allocation11 + $0xac] ss:$16 sps:$4 sm:$0xff]  }
 0x172   :  { %1548 = vmatpush2.bf16.msra.mxu1 %v3616_v1  ;;  %1589 = vmatpush2.bf16.msra.mxu0 %v3619_v2  ;;  %v3675_v1 = vld [vmem:[#allocation11 + $0x2ac] ss:$16 sps:$4 sm:$0xff]   ;;  %v3670_v2 = vld [vmem:[#allocation11 + $0xa8] ss:$16 sps:$4 sm:$0xff]  }
 0x173   :  { %1549 = vmatprep.subr.bf16.mxu1 %v3624_v3  ;;  %1590 = vmatprep.subr.bf16.mxu0 %v3627_v4  ;;  %v3673_v3 = vld [vmem:[#allocation11 + $0x2a8] ss:$16 sps:$4 sm:$0xff]   ;;  %v3678_v4 = vld [vmem:[#allocation11 + $0x8c] ss:$16 sps:$4 sm:$0xff]  }
 0x176   :  { %1550 = vmatpush2.bf16.msra.mxu1 %v3622_v5  ;;  %1591 = vmatpush2.bf16.msra.mxu0 %v3625_v6  ;;  %v3681_v5 = vld [vmem:[#allocation11 + $0x28c] ss:$16 sps:$4 sm:$0xff]   ;;  %v3676_v6 = vld [vmem:[#allocation11 + $0x88] ss:$16 sps:$4 sm:$0xff]  }
 0x177   :  { %1551 = vmatprep.subr.bf16.mxu1 %v3630_v7  ;;  %1592 = vmatprep.subr.bf16.mxu0 %v3633_v8  ;;  %v3679_v7 = vld [vmem:[#allocation11 + $0x288] ss:$16 sps:$4 sm:$0xff]   ;;  %v3684_v8 = vld [vmem:[#allocation11 + $0x6c] ss:$16 sps:$4 sm:$0xff]  }
 0x17a   :  { %1552 = vmatpush2.bf16.msra.mxu1 %v3628_v9  ;;  %1593 = vmatpush2.bf16.msra.mxu0 %v3631_v10  ;;  %v3687_v9 = vld [vmem:[#allocation11 + $0x26c] ss:$16 sps:$4 sm:$0xff]   ;;  %v3682_v10 = vld [vmem:[#allocation11 + $0x68] ss:$16 sps:$4 sm:$0xff]  }
 0x17b   :  { %1553 = vmatprep.subr.bf16.mxu1 %v3636_v11  ;;  %1594 = vmatprep.subr.bf16.mxu0 %v3639_v12  ;;  %v3685_v11 = vld [vmem:[#allocation11 + $0x268] ss:$16 sps:$4 sm:$0xff]   ;;  %v3690_v12 = vld [vmem:[#allocation11 + $0x4c] ss:$16 sps:$4 sm:$0xff]  }
 0x17e   :  { %1554 = vmatpush2.bf16.msra.mxu1 %v3634_v15  ;;  %1595 = vmatpush2.bf16.msra.mxu0 %v3637_v17  ;;  %v3693_v15 = vld [vmem:[#allocation11 + $0x24c] ss:$16 sps:$4 sm:$0xff]   ;;  %v3688_v17 = vld [vmem:[#allocation11 + $0x48] ss:$16 sps:$4 sm:$0xff]  }
 0x17f   :  { %1555 = vmatprep.subr.bf16.mxu1 %v3642_v18  ;;  %1596 = vmatprep.subr.bf16.mxu0 %v3645_v19  ;;  %v3691_v18 = vld [vmem:[#allocation11 + $0x248] ss:$16 sps:$4 sm:$0xff]   ;;  %v3696_v19 = vld [vmem:[#allocation11 + $0x2c] ss:$16 sps:$4 sm:$0xff]  }
 0x182   :  { %1556 = vmatpush2.bf16.msra.mxu1 %v3640_v20  ;;  %1597 = vmatpush2.bf16.msra.mxu0 %v3643_v21  ;;  %v3699_v20 = vld [vmem:[#allocation11 + $0x22c] ss:$16 sps:$4 sm:$0xff]   ;;  %v3694_v21 = vld [vmem:[#allocation11 + $0x28] ss:$16 sps:$4 sm:$0xff]  }
 0x183   :  { %1557 = vmatprep.subr.bf16.mxu1 %v3648_v22  ;;  %1598 = vmatprep.subr.bf16.mxu0 %v3651_v23  ;;  %v3697_v22 = vld [vmem:[#allocation11 + $0x228] ss:$16 sps:$4 sm:$0xff]   ;;  %v3702_v23 = vld [vmem:[#allocation11 + $0xc] ss:$16 sps:$4 sm:$0xff]  }
 0x186   :  { %1558 = vmatpush2.bf16.msra.mxu1 %v3646_v24  ;;  %1599 = vmatpush2.bf16.msra.mxu0 %v3649_v25  ;;  %v3705_v24 = vld [vmem:[#allocation11 + $0x20c] ss:$16 sps:$4 sm:$0xff]   ;;  %v3700_v25 = vld [vmem:[#allocation11 + $0x8] ss:$16 sps:$4 sm:$0xff]  }
 0x187   :  { %1559 = vmatprep.subr.bf16.mxu1 %v3654_v26  ;;  %1600 = vmatprep.subr.bf16.mxu0 %v3657_v27  ;;  %v3703_v26 = vld [vmem:[#allocation11 + $0x208] ss:$16 sps:$4 sm:$0xff]   ;;  %v3708_v27 = vld [vmem:[#allocation11 + $0x1ec] ss:$16 sps:$4 sm:$0xff]  }
 0x18a   :  { %1560 = vmatpush2.bf16.msra.mxu1 %v3652_v28  ;;  %1601 = vmatpush2.bf16.msra.mxu0 %v3655_v29  ;;  %v3711_v28 = vld [vmem:[#allocation11 + $0x3ec] ss:$16 sps:$4 sm:$0xff]   ;;  %v3706_v29 = vld [vmem:[#allocation11 + $0x1e8] ss:$16 sps:$4 sm:$0xff]  }
 0x18b   :  { %1611 = vmatprep.subr.bf16.mxu1 %v3660_v30  ;;  %1652 = vmatprep.subr.bf16.mxu0 %v3663_v31  ;;  %v3709_v30 = vld [vmem:[#allocation11 + $0x3e8] ss:$16 sps:$4 sm:$0xff]   ;;  %v3714_v31 = vld [vmem:[#allocation11 + $0x1cc] ss:$16 sps:$4 sm:$0xff]  }
 0x20d   :  { %v683_v39 = vpop.f32.mrf.mxu1  ;;  %v724_v40 = vpop.f32.mrf.mxu0 }
 0x20e   :  { %v684_v41 = vadd.f32 %v683_v39, %v312_v35  ;;  %v725_v42 = vadd.f32 %v724_v40, %v320_v36  ;;  %v3712_v35 = vld [vmem:[#allocation11 + $0x1c8] ss:$16 sps:$4 sm:$0xff]  }
 0x20f   :  { %v685_v43 = vpop.f32.mrf.mxu1  ;;  %v726_v44 = vpop.f32.mrf.mxu0  ;;  %v3715_v36 = vld [vmem:[#allocation11 + $0x3c8] ss:$16 sps:$4 sm:$0xff]  }
 0x210   :  { %3982 = vtanh.f32 %v684_v41  ;;  %v686_v45 = vadd.f32 %v685_v43, %v316_v37  ;;  %v727_v46 = vadd.f32 %v726_v44, %v324_v38  ;;  %v3720_v37 = vld [vmem:[#allocation11 + $0x1ac] ss:$16 sps:$4 sm:$0xff]   ;;  %v3718_v39 = vld [vmem:[#allocation11 + $0x1a8] ss:$16 sps:$4 sm:$0xff]  }
 0x211   :  { %3984 = vtanh.f32 %v725_v42  ;;  %v687_v13 = vpop.f32.mrf.mxu1  ;;  %v728_v47 = vpop.f32.mrf.mxu0  ;;  %v3723_v38 = vld [vmem:[#allocation11 + $0x3ac] ss:$16 sps:$4 sm:$0xff]   ;;  %v3721_v40 = vld [vmem:[#allocation11 + $0x3a8] ss:$16 sps:$4 sm:$0xff]  }
 0x212   :  { %3986 = vtanh.f32 %v686_v45  ;;  %v3726_v41 = vld [vmem:[#allocation11 + $0x18c] ss:$16 sps:$4 sm:$0xff]   ;;  %v3724_v43 = vld [vmem:[#allocation11 + $0x188] ss:$16 sps:$4 sm:$0xff]  }
 0x213   :  { %3988 = vtanh.f32 %v727_v46  ;;  %v688_v48 = vpop.f32.mrf.mxu1  ;;  %v729_v49 = vpop.f32.mrf.mxu0  ;;  %v3729_v42 = vld [vmem:[#allocation11 + $0x38c] ss:$16 sps:$4 sm:$0xff]   ;;  %v3727_v44 = vld [vmem:[#allocation11 + $0x388] ss:$16 sps:$4 sm:$0xff]  }
 0x214   :  { %v3732_v45 = vld [vmem:[#allocation11 + $0x16c] ss:$16 sps:$4 sm:$0xff]   ;;  %v3730_v13 = vld [vmem:[#allocation11 + $0x168] ss:$16 sps:$4 sm:$0xff]  }
 0x215   :  { %v3735_v46 = vld [vmem:[#allocation11 + $0x36c] ss:$16 sps:$4 sm:$0xff]   ;;  %v3733_v47 = vld [vmem:[#allocation11 + $0x368] ss:$16 sps:$4 sm:$0xff]  }
 0x216   :  { %v3738_v48 = vld [vmem:[#allocation11 + $0x14c] ss:$16 sps:$4 sm:$0xff]  }
 0x217   :  { %v3741_v49 = vld [vmem:[#allocation11 + $0x34c] ss:$16 sps:$4 sm:$0xff]  }
 0x21d   :  { %v3983_v50 = vpop.eup %3982 }
 0x21e   :  { %v3985_v51 = vpop.eup %3984  ;;  %v4364_v56 = vpack.c.bf16 %v3983_v50, %v3983_v50  ;;  %v3736_v50 = vld [vmem:[#allocation11 + $0x148] ss:$16 sps:$4 sm:$0xff]  }
 0x21f   :  { %v3987_v52 = vpop.eup %3986  ;;  %v4366_v59 = vpack.c.bf16 %v3985_v51, %v3985_v51  ;;  %v3739_v51 = vld [vmem:[#allocation11 + $0x348] ss:$16 sps:$4 sm:$0xff]  }
 0x220   :  { %v3989_v53 = vpop.eup %3988  ;;  %v736_v54 = vpack.c.bf16 %v3987_v52, %v3987_v52  ;;  %v3744_v52 = vld [vmem:[#allocation11 + $0x12c] ss:$16 sps:$4 sm:$0xff]  }
 0x221   :  { %v738_v57 = vpack.c.bf16 %v3989_v53, %v3989_v53  ;;  %v3747_v53 = vld [vmem:[#allocation11 + $0x32c] ss:$16 sps:$4 sm:$0xff]  }
 0x222   :  { %1561 = vmatprep.mubr.bf16.mxu1 %v736_v54 }
 0x223   :  { %1602 = vmatprep.mubr.bf16.mxu0 %v738_v57  ;;  %1562 = vmatmul.mubr.bf16.vlgmr.msra.gmra.mxu1 %v4364_v56 }
 0x224   :  { %1603 = vmatmul.mubr.bf16.vlgmr.msra.gmra.mxu0 %v4366_v59  ;;  %1612 = vmatpush1.bf16.msra.mxu1 %v3658_v55  ;;  %v3745_v55 = vld [vmem:[#allocation11 + $0x328] ss:$16 sps:$4 sm:$0xff]  }
 0x225   :  { %1653 = vmatpush1.bf16.msra.mxu0 %v3661_v58  ;;  %1643 = vmatprep.mubr.bf16.mxu1 %v736_v54  ;;  %v3742_v54 = vld [vmem:[#allocation11 + $0x128] ss:$16 sps:$4 sm:$0xff]   ;;  %v3753_v58 = vld [vmem:[#allocation11 + $0x30c] ss:$16 sps:$4 sm:$0xff]  }
 0x226   :  { %1684 = vmatprep.mubr.bf16.mxu0 %v738_v57  ;;  %1613 = vmatprep.subr.bf16.mxu1 %v3666_v60  ;;  %v3750_v57 = vld [vmem:[#allocation11 + $0x10c] ss:$16 sps:$4 sm:$0xff]   ;;  %v3748_v60 = vld [vmem:[#allocation11 + $0x108] ss:$16 sps:$4 sm:$0xff]  }
 0x227   :  { %1654 = vmatprep.subr.bf16.mxu0 %v3669_v61  ;;  %v3751_v61 = vld [vmem:[#allocation11 + $0x308] ss:$16 sps:$4 sm:$0xff]  }
 0x228   :  { %1614 = vmatpush1.bf16.msra.mxu1 %v3664_v62  ;;  %v3756_v62 = vld [vmem:[#allocation13 + $0xe4] ss:$16 sps:$4 sm:$0xff]  }
 0x229   :  { %1655 = vmatpush1.bf16.msra.mxu0 %v3667_v63  ;;  %1615 = vmatprep.subr.bf16.mxu1 %v3672_v0  ;;  %v3754_v63 = vld [vmem:[#allocation13 + $0xe0] ss:$16 sps:$4 sm:$0xff]   ;;  %v3759_v0 = vld [vmem:[#allocation13 + $0xc4] ss:$16 sps:$4 sm:$0xff]  }
 0x22a   :  { %1656 = vmatprep.subr.bf16.mxu0 %v3675_v1  ;;  %v3757_v1 = vld [vmem:[#allocation13 + $0xc0] ss:$16 sps:$4 sm:$0xff]  }
 0x22c   :  { %1616 = vmatpush1.bf16.msra.mxu1 %v3670_v2  ;;  %v3762_v2 = vld [vmem:[#allocation13 + $0xa4] ss:$16 sps:$4 sm:$0xff]  }
 0x22d   :  { %1657 = vmatpush1.bf16.msra.mxu0 %v3673_v3  ;;  %1617 = vmatprep.subr.bf16.mxu1 %v3678_v4  ;;  %v3760_v3 = vld [vmem:[#allocation13 + $0xa0] ss:$16 sps:$4 sm:$0xff]   ;;  %v3765_v4 = vld [vmem:[#allocation13 + $0x84] ss:$16 sps:$4 sm:$0xff]  }
 0x22e   :  { %1658 = vmatprep.subr.bf16.mxu0 %v3681_v5  ;;  %v3763_v5 = vld [vmem:[#allocation13 + $0x80] ss:$16 sps:$4 sm:$0xff]  }
 0x230   :  { %1618 = vmatpush1.bf16.msra.mxu1 %v3676_v6  ;;  %v3768_v6 = vld [vmem:[#allocation13 + $0x64] ss:$16 sps:$4 sm:$0xff]  }
 0x231   :  { %1659 = vmatpush1.bf16.msra.mxu0 %v3679_v7  ;;  %1619 = vmatprep.subr.bf16.mxu1 %v3684_v8  ;;  %v3766_v7 = vld [vmem:[#allocation13 + $0x60] ss:$16 sps:$4 sm:$0xff]   ;;  %v3771_v8 = vld [vmem:[#allocation13 + $0x44] ss:$16 sps:$4 sm:$0xff]  }
 0x232   :  { %1660 = vmatprep.subr.bf16.mxu0 %v3687_v9  ;;  %v3802_v9 = vld [vmem:[#allocation13 + $0x2e0] ss:$16 sps:$4 sm:$0xff]  }
 0x234   :  { %1620 = vmatpush1.bf16.msra.mxu1 %v3682_v10  ;;  %v3804_v10 = vld [vmem:[#allocation13 + $0x2e4] ss:$16 sps:$4 sm:$0xff]  }
 0x235   :  { %1661 = vmatpush1.bf16.msra.mxu0 %v3685_v11  ;;  %1621 = vmatprep.subr.bf16.mxu1 %v3690_v12  ;;  %v3772_v11 = vld [vmem:[#allocation13 + $0x20] ss:$16 sps:$4 sm:$0xff]   ;;  %v3777_v12 = vld [vmem:[#allocation13 + $0x4] ss:$16 sps:$4 sm:$0xff]  }
 0x236   :  { %1662 = vmatprep.subr.bf16.mxu0 %v3693_v15  ;;  %v3775_v15 = vld [vmem:[#allocation13] ss:$16 sps:$4 sm:$0xff]  }
 0x238   :  { %1622 = vmatpush1.bf16.msra.mxu1 %v3688_v17  ;;  %v3808_v17 = vld [vmem:[#allocation13 + $0x2c0] ss:$16 sps:$4 sm:$0xff]  }
 0x239   :  { %1663 = vmatpush1.bf16.msra.mxu0 %v3691_v18  ;;  %1623 = vmatprep.subr.bf16.mxu1 %v3696_v19  ;;  %v3810_v18 = vld [vmem:[#allocation13 + $0x2c4] ss:$16 sps:$4 sm:$0xff]  }
 0x23a   :  { %1664 = vmatprep.subr.bf16.mxu0 %v3699_v20  ;;  %v3780_v19 = vld [vmem:[#allocation13 + $0x1e4] ss:$16 sps:$4 sm:$0xff]   ;;  %v3778_v20 = vld [vmem:[#allocation13 + $0x1e0] ss:$16 sps:$4 sm:$0xff]  }
 0x23c   :  { %1624 = vmatpush1.bf16.msra.mxu1 %v3694_v21  ;;  %v3814_v21 = vld [vmem:[#allocation13 + $0x2a0] ss:$16 sps:$4 sm:$0xff]  }
 0x23d   :  { %1665 = vmatpush1.bf16.msra.mxu0 %v3697_v22  ;;  %1625 = vmatprep.subr.bf16.mxu1 %v3702_v23  ;;  %v3816_v22 = vld [vmem:[#allocation13 + $0x2a4] ss:$16 sps:$4 sm:$0xff]  }
 0x23e   :  { %1666 = vmatprep.subr.bf16.mxu0 %v3705_v24  ;;  %v3783_v23 = vld [vmem:[#allocation13 + $0x1c4] ss:$16 sps:$4 sm:$0xff]   ;;  %v3781_v24 = vld [vmem:[#allocation13 + $0x1c0] ss:$16 sps:$4 sm:$0xff]  }
 0x240   :  { %1626 = vmatpush1.bf16.msra.mxu1 %v3700_v25  ;;  %v3820_v25 = vld [vmem:[#allocation13 + $0x280] ss:$16 sps:$4 sm:$0xff]  }
 0x241   :  { %1667 = vmatpush1.bf16.msra.mxu0 %v3703_v26  ;;  %1627 = vmatprep.subr.bf16.mxu1 %v3708_v27  ;;  %v3822_v26 = vld [vmem:[#allocation13 + $0x284] ss:$16 sps:$4 sm:$0xff]  }
 0x242   :  { %1668 = vmatprep.subr.bf16.mxu0 %v3711_v28  ;;  %v3786_v27 = vld [vmem:[#allocation13 + $0x1a4] ss:$16 sps:$4 sm:$0xff]   ;;  %v3784_v28 = vld [vmem:[#allocation13 + $0x1a0] ss:$16 sps:$4 sm:$0xff]  }
 0x244   :  { %1628 = vmatpush2.bf16.msra.mxu1 %v3706_v29  ;;  %v3826_v29 = vld [vmem:[#allocation13 + $0x260] ss:$16 sps:$4 sm:$0xff]  }
 0x245   :  { %1669 = vmatpush2.bf16.msra.mxu0 %v3709_v30  ;;  %1629 = vmatprep.subr.bf16.mxu1 %v3714_v31  ;;  %v3828_v30 = vld [vmem:[#allocation13 + $0x264] ss:$16 sps:$4 sm:$0xff]  }
 0x246   :  { %1670 = vmatprep.subr.bf16.mxu0 %v3717_v33  ;;  %v3789_v31 = vld [vmem:[#allocation13 + $0x184] ss:$16 sps:$4 sm:$0xff]   ;;  %v3787_v33 = vld [vmem:[#allocation13 + $0x180] ss:$16 sps:$4 sm:$0xff]  }
 0x248   :  { %1630 = vmatpush2.bf16.msra.mxu1 %v3712_v35  ;;  %v3832_v35 = vld [vmem:[#allocation13 + $0x240] ss:$16 sps:$4 sm:$0xff]  }
 0x249   :  { %1671 = vmatpush2.bf16.msra.mxu0 %v3715_v36  ;;  %1631 = vmatprep.subr.bf16.mxu1 %v3720_v37  ;;  %v3834_v36 = vld [vmem:[#allocation13 + $0x244] ss:$16 sps:$4 sm:$0xff]  }
 0x24a   :  { %1672 = vmatprep.subr.bf16.mxu0 %v3723_v38  ;;  %v3792_v37 = vld [vmem:[#allocation13 + $0x164] ss:$16 sps:$4 sm:$0xff]   ;;  %v3790_v38 = vld [vmem:[#allocation13 + $0x160] ss:$16 sps:$4 sm:$0xff]  }
 0x24c   :  { %1632 = vmatpush2.bf16.msra.mxu1 %v3718_v39  ;;  %v3838_v39 = vld [vmem:[#allocation13 + $0x220] ss:$16 sps:$4 sm:$0xff]  }
 0x24d   :  { %1673 = vmatpush2.bf16.msra.mxu0 %v3721_v40  ;;  %1633 = vmatprep.subr.bf16.mxu1 %v3726_v41  ;;  %v3840_v40 = vld [vmem:[#allocation13 + $0x224] ss:$16 sps:$4 sm:$0xff]  }
 0x24e   :  { %1674 = vmatprep.subr.bf16.mxu0 %v3729_v42  ;;  %v3795_v41 = vld [vmem:[#allocation13 + $0x144] ss:$16 sps:$4 sm:$0xff]   ;;  %v3793_v42 = vld [vmem:[#allocation13 + $0x140] ss:$16 sps:$4 sm:$0xff]  }
 0x250   :  { %1634 = vmatpush2.bf16.msra.mxu1 %v3724_v43  ;;  %v3844_v43 = vld [vmem:[#allocation13 + $0x200] ss:$16 sps:$4 sm:$0xff]  }
 0x251   :  { %1675 = vmatpush2.bf16.msra.mxu0 %v3727_v44  ;;  %1635 = vmatprep.subr.bf16.mxu1 %v3732_v45  ;;  %v3846_v44 = vld [vmem:[#allocation13 + $0x204] ss:$16 sps:$4 sm:$0xff]  }
 0x252   :  { %1676 = vmatprep.subr.bf16.mxu0 %v3735_v46  ;;  %v3798_v45 = vld [vmem:[#allocation13 + $0x124] ss:$16 sps:$4 sm:$0xff]   ;;  %v3796_v46 = vld [vmem:[#allocation13 + $0x120] ss:$16 sps:$4 sm:$0xff]  }
 0x254   :  { %1636 = vmatpush2.bf16.msra.mxu1 %v3730_v13  ;;  %v3850_v13 = vld [vmem:[#allocation13 + $0x3e0] ss:$16 sps:$4 sm:$0xff]  }
 0x255   :  { %1677 = vmatpush2.bf16.msra.mxu0 %v3733_v47  ;;  %1637 = vmatprep.subr.bf16.mxu1 %v3738_v48  ;;  %v3852_v47 = vld [vmem:[#allocation13 + $0x3e4] ss:$16 sps:$4 sm:$0xff]  }
 0x256   :  { %1678 = vmatprep.subr.bf16.mxu0 %v3741_v49  ;;  %v3801_v48 = vld [vmem:[#allocation13 + $0x104] ss:$16 sps:$4 sm:$0xff]   ;;  %v3799_v49 = vld [vmem:[#allocation13 + $0x100] ss:$16 sps:$4 sm:$0xff]  }
 0x258   :  { %1638 = vmatpush2.bf16.msra.mxu1 %v3736_v50  ;;  %v3856_v50 = vld [vmem:[#allocation13 + $0x3c0] ss:$16 sps:$4 sm:$0xff]  }
 0x259   :  { %1679 = vmatpush2.bf16.msra.mxu0 %v3739_v51  ;;  %1639 = vmatprep.subr.bf16.mxu1 %v3744_v52  ;;  %v3858_v51 = vld [vmem:[#allocation13 + $0x3c4] ss:$16 sps:$4 sm:$0xff]   ;;  %v3807_v52 = vld [vmem:[#allocation13 + $0xec] ss:$16 sps:$4 sm:$0xff]  }
 0x25a   :  { %1680 = vmatprep.subr.bf16.mxu0 %v3747_v53  ;;  %v3862_v53 = vld [vmem:[#allocation13 + $0x3a0] ss:$16 sps:$4 sm:$0xff]  }
 0x25c   :  { %1640 = vmatpush2.bf16.msra.mxu1 %v3742_v54  ;;  %v3864_v54 = vld [vmem:[#allocation13 + $0x3a4] ss:$16 sps:$4 sm:$0xff]  }
 0x25d   :  { %1681 = vmatpush2.bf16.msra.mxu0 %v3745_v55  ;;  %1641 = vmatprep.subr.bf16.mxu1 %v3750_v57  ;;  %v3870_v55 = vld [vmem:[#allocation13 + $0x384] ss:$16 sps:$4 sm:$0xff]   ;;  %v3868_v57 = vld [vmem:[#allocation13 + $0x380] ss:$16 sps:$4 sm:$0xff]  }
 0x25e   :  { %1682 = vmatprep.subr.bf16.mxu0 %v3753_v58  ;;  %v3876_v58 = vld [vmem:[#allocation13 + $0x364] ss:$16 sps:$4 sm:$0xff]  }
 0x260   :  { %1642 = vmatpush2.bf16.msra.mxu1 %v3748_v60  ;;  %v3874_v60 = vld [vmem:[#allocation13 + $0x360] ss:$16 sps:$4 sm:$0xff]  }
 0x261   :  { %1683 = vmatpush2.bf16.msra.mxu0 %v3751_v61  ;;  %2491 = vmatprep.subr.bf16.mxu1 %v3756_v62  ;;  %v3882_v61 = vld [vmem:[#allocation13 + $0x344] ss:$16 sps:$4 sm:$0xff]   ;;  %v3880_v62 = vld [vmem:[#allocation13 + $0x340] ss:$16 sps:$4 sm:$0xff]  }
 0x262   :  { %2532 = vmatprep.subr.bf16.mxu0 %v3804_v10 }
 0x263   :  { %1644 = vmatmul.mubr.bf16.vlgmr.msra.gmra.mxu1 %v4364_v56  ;;  %v3769_v56 = vld [vmem:[#allocation13 + $0x40] ss:$16 sps:$4 sm:$0xff]  }
 0x264   :  { %1685 = vmatmul.mubr.bf16.vlgmr.msra.gmra.mxu0 %v4366_v59  ;;  %2492 = vmatpush1.bf16.msra.mxu1 %v3754_v63  ;;  %v3774_v59 = vld [vmem:[#allocation13 + $0x24] ss:$16 sps:$4 sm:$0xff]  }
 0x265   :  { %2493 = vmatprep.subr.bf16.mxu1 %v3759_v0  ;;  %2533 = vmatpush1.bf16.msra.mxu0 %v3802_v9  ;;  %v3888_v63 = vld [vmem:[#allocation13 + $0x324] ss:$16 sps:$4 sm:$0xff]   ;;  %v3886_v0 = vld [vmem:[#allocation13 + $0x320] ss:$16 sps:$4 sm:$0xff]  }
 0x266   :  { %2534 = vmatprep.subr.bf16.mxu0 %v3810_v18 }
 0x268   :  { %2494 = vmatpush1.bf16.msra.mxu1 %v3757_v1  ;;  %v3894_v1 = vld [vmem:[#allocation13 + $0x304] ss:$16 sps:$4 sm:$0xff]  }
 0x269   :  { %2495 = vmatprep.subr.bf16.mxu1 %v3762_v2  ;;  %2535 = vmatpush1.bf16.msra.mxu0 %v3808_v17  ;;  %v3892_v2 = vld [vmem:[#allocation13 + $0x300] ss:$16 sps:$4 sm:$0xff]  }
 0x26a   :  { %2536 = vmatprep.subr.bf16.mxu0 %v3816_v22 }
 0x26c   :  { %2496 = vmatpush1.bf16.msra.mxu1 %v3760_v3  ;;  %v3900_v3 = vld [vmem:[#allocation13 + $0x2ec] ss:$16 sps:$4 sm:$0xff]  }
 0x26d   :  { %2497 = vmatprep.subr.bf16.mxu1 %v3765_v4  ;;  %2537 = vmatpush1.bf16.msra.mxu0 %v3814_v21  ;;  %v4375_v4 = vld [vmem:[%s4415_s6] sm:$0xf] }
 0x26e   :  { %2538 = vmatprep.subr.bf16.mxu0 %v3822_v26  ;;  %v3811_v26 = vld [vmem:[#allocation13 + $0xc8] ss:$16 sps:$4 sm:$0xff]  }
 0x270   :  { %2498 = vmatpush1.bf16.msra.mxu1 %v3763_v5  ;;  %v872_v5 = vrot.slane %v4375_v4, %v4347_v14 }
 0x271   :  { %2499 = vmatprep.subr.bf16.mxu1 %v3768_v6  ;;  %2539 = vmatpush1.bf16.msra.mxu0 %v3820_v25  ;;  %v876_v6 = vrot.slane %v4375_v4, %v4350_v16  ;;  %v3813_v25 = vld [vmem:[#allocation13 + $0xcc] ss:$16 sps:$4 sm:$0xff]  }
 0x272   :  { %2540 = vmatprep.subr.bf16.mxu0 %v3828_v30  ;;  %v3823_v30 = vld [vmem:[#allocation13 + $0x88] ss:$16 sps:$4 sm:$0xff]  }
 0x274   :  { %2500 = vmatpush1.bf16.msra.mxu1 %v3766_v7 }
 0x275   :  { %2501 = vmatprep.subr.bf16.mxu1 %v3771_v8  ;;  %2541 = vmatpush1.bf16.msra.mxu0 %v3826_v29  ;;  %v3825_v29 = vld [vmem:[#allocation13 + $0x8c] ss:$16 sps:$4 sm:$0xff]  }
 0x276   :  { %2542 = vmatprep.subr.bf16.mxu0 %v3834_v36  ;;  %v3835_v36 = vld [vmem:[#allocation13 + $0x48] ss:$16 sps:$4 sm:$0xff]  }
 0x278   :  { %2502 = vmatpush1.bf16.msra.mxu1 %v3769_v56 }
 0x279   :  { %2503 = vmatprep.subr.bf16.mxu1 %v3774_v59  ;;  %2543 = vmatpush1.bf16.msra.mxu0 %v3832_v35  ;;  %v3837_v35 = vld [vmem:[#allocation13 + $0x4c] ss:$16 sps:$4 sm:$0xff]  }
 0x27a   :  { %2544 = vmatprep.subr.bf16.mxu0 %v3840_v40  ;;  %v3847_v40 = vld [vmem:[#allocation13 + $0x8] ss:$16 sps:$4 sm:$0xff]  }
 0x27c   :  { %2504 = vmatpush1.bf16.msra.mxu1 %v3772_v11 }
 0x27d   :  { %2505 = vmatprep.subr.bf16.mxu1 %v3777_v12  ;;  %2545 = vmatpush1.bf16.msra.mxu0 %v3838_v39  ;;  %v3849_v39 = vld [vmem:[#allocation13 + $0xc] ss:$16 sps:$4 sm:$0xff]  }
 0x27e   :  { %2546 = vmatprep.subr.bf16.mxu0 %v3846_v44  ;;  %v3859_v44 = vld [vmem:[#allocation13 + $0x1c8] ss:$16 sps:$4 sm:$0xff]  }
 0x280   :  { %2506 = vmatpush1.bf16.msra.mxu1 %v3775_v15 }
 0x281   :  { %2507 = vmatprep.subr.bf16.mxu1 %v3780_v19  ;;  %2547 = vmatpush1.bf16.msra.mxu0 %v3844_v43  ;;  %v3861_v43 = vld [vmem:[#allocation13 + $0x1cc] ss:$16 sps:$4 sm:$0xff]  }
 0x282   :  { %2548 = vmatprep.subr.bf16.mxu0 %v3852_v47  ;;  %v3873_v47 = vld [vmem:[#allocation13 + $0x18c] ss:$16 sps:$4 sm:$0xff]  }
 0x284   :  { %2508 = vmatpush2.bf16.msra.mxu1 %v3778_v20 }
 0x285   :  { %2509 = vmatprep.subr.bf16.mxu1 %v3783_v23  ;;  %2549 = vmatpush2.bf16.msra.mxu0 %v3850_v13  ;;  %v3805_v23 = vld [vmem:[#allocation13 + $0xe8] ss:$16 sps:$4 sm:$0xff]  }
 0x286   :  { %2550 = vmatprep.subr.bf16.mxu0 %v3858_v51  ;;  %v3865_v13 = vld [vmem:[#allocation13 + $0x1a8] ss:$16 sps:$4 sm:$0xff]  }
 0x288   :  { %2510 = vmatpush2.bf16.msra.mxu1 %v3781_v24 }
 0x289   :  { %2511 = vmatprep.subr.bf16.mxu1 %v3786_v27  ;;  %2551 = vmatpush2.bf16.msra.mxu0 %v3856_v50  ;;  %v3819_v27 = vld [vmem:[#allocation13 + $0xac] ss:$16 sps:$4 sm:$0xff]  }
 0x28a   :  { %2552 = vmatprep.subr.bf16.mxu0 %v3864_v54  ;;  %v3879_v54 = vld [vmem:[#allocation13 + $0x16c] ss:$16 sps:$4 sm:$0xff]  }
 0x28c   :  { %2512 = vmatpush2.bf16.msra.mxu1 %v3784_v28  ;;  %v3817_v28 = vld [vmem:[#allocation13 + $0xa8] ss:$16 sps:$4 sm:$0xff]  }
 0x28d   :  { %2513 = vmatprep.subr.bf16.mxu1 %v3789_v31  ;;  %2553 = vmatpush2.bf16.msra.mxu0 %v3862_v53  ;;  %v3831_v31 = vld [vmem:[#allocation13 + $0x6c] ss:$16 sps:$4 sm:$0xff]  }
 0x28e   :  { %2554 = vmatprep.subr.bf16.mxu0 %v3870_v55 }
 0x290   :  { %2514 = vmatpush2.bf16.msra.mxu1 %v3787_v33  ;;  %v3829_v33 = vld [vmem:[#allocation13 + $0x68] ss:$16 sps:$4 sm:$0xff]  }
 0x291   :  { %2515 = vmatprep.subr.bf16.mxu1 %v3792_v37  ;;  %2555 = vmatpush2.bf16.msra.mxu0 %v3868_v57  ;;  %v3843_v37 = vld [vmem:[#allocation13 + $0x2c] ss:$16 sps:$4 sm:$0xff]  }
 0x292   :  { %2556 = vmatprep.subr.bf16.mxu0 %v3876_v58 }
 0x294   :  { %2516 = vmatpush2.bf16.msra.mxu1 %v3790_v38  ;;  %v3841_v38 = vld [vmem:[#allocation13 + $0x28] ss:$16 sps:$4 sm:$0xff]  }
 0x295   :  { %2517 = vmatprep.subr.bf16.mxu1 %v3795_v41  ;;  %2557 = vmatpush2.bf16.msra.mxu0 %v3874_v60  ;;  %v3855_v41 = vld [vmem:[#allocation13 + $0x1ec] ss:$16 sps:$4 sm:$0xff]  }
 0x296   :  { %2558 = vmatprep.subr.bf16.mxu0 %v3882_v61 }
 0x298   :  { %2518 = vmatpush2.bf16.msra.mxu1 %v3793_v42  ;;  %v3853_v42 = vld [vmem:[#allocation13 + $0x1e8] ss:$16 sps:$4 sm:$0xff]  }
 0x299   :  { %2519 = vmatprep.subr.bf16.mxu1 %v3798_v45  ;;  %2559 = vmatpush2.bf16.msra.mxu0 %v3880_v62  ;;  %v3867_v45 = vld [vmem:[#allocation13 + $0x1ac] ss:$16 sps:$4 sm:$0xff]  }
 0x29a   :  { %2560 = vmatprep.subr.bf16.mxu0 %v3888_v63  ;;  %v3877_v63 = vld [vmem:[#allocation13 + $0x168] ss:$16 sps:$4 sm:$0xff]  }
 0x29c   :  { %2520 = vmatpush2.bf16.msra.mxu1 %v3796_v46  ;;  %v880_v46 = vrot.slane %v4375_v4, %v4355_v32 }
 0x29d   :  { %2521 = vmatprep.subr.bf16.mxu1 %v3801_v48  ;;  %2561 = vmatpush2.bf16.msra.mxu0 %v3886_v0  ;;  %v884_v48 = vrot.slane %v4375_v4, %v4358_v34  ;;  %v3891_v4 = vld [vmem:[#allocation13 + $0x12c] ss:$16 sps:$4 sm:$0xff]  }
 0x29e   :  { %2562 = vmatprep.subr.bf16.mxu0 %v3894_v1  ;;  %v3885_v1 = vld [vmem:[#allocation13 + $0x14c] ss:$16 sps:$4 sm:$0xff]  }
 0x2a0   :  { %2522 = vmatpush2.bf16.msra.mxu1 %v3799_v49 }
 0x2a1   :  { %2573 = vmatprep.subr.bf16.mxu1 %v3807_v52  ;;  %2563 = vmatpush2.bf16.msra.mxu0 %v3892_v2  ;;  %v3871_v52 = vld [vmem:[#allocation13 + $0x188] ss:$16 sps:$4 sm:$0xff]  }
 0x2a2   :  { %2614 = vmatprep.subr.bf16.mxu0 %v3900_v3  ;;  %v3883_v3 = vld [vmem:[#allocation13 + $0x148] ss:$16 sps:$4 sm:$0xff]  }
 0x2e3   :  { %v1563_v7 = vpop.f32.mrf.mxu1 }
 0x2e4   :  { %v1564_v8 = vadd.f32 %v1563_v7, %v872_v5  ;;  %v1604_v56 = vpop.f32.mrf.mxu0  ;;  %v3889_v5 = vld [vmem:[#allocation13 + $0x128] ss:$16 sps:$4 sm:$0xff]  }
 0x2e5   :  { %v1565_v59 = vpop.f32.mrf.mxu1  ;;  %v3895_v7 = vld [vmem:[#allocation13 + $0x108] ss:$16 sps:$4 sm:$0xff]  }
 0x2e6   :  { %v1605_v9 = vadd.f32 %v1604_v56, %v1564_v8  ;;  %v1566_v10 = vadd.f32 %v1565_v59, %v876_v6  ;;  %v1606_v11 = vpop.f32.mrf.mxu0  ;;  %v3897_v6 = vld [vmem:[#allocation13 + $0x10c] ss:$16 sps:$4 sm:$0xff]  }
 0x2e7   :  { %v1567_v12 = vpop.f32.mrf.mxu1 }
 0x2e8   :  { %v1607_v15 = vadd.f32 %v1606_v11, %v1566_v10  ;;  %v1608_v17 = vpop.f32.mrf.mxu0  ;;  %3990 = vtanh.f32 %v1605_v9  ;;  %v3898_v9 = vld [vmem:[#allocation13 + $0x2e8] ss:$16 sps:$4 sm:$0xff]   ;;  %v3903_v11 = vld [vmem:[#allocation13 + $0x2cc] ss:$16 sps:$4 sm:$0xff]  }
 0x2e9   :  { %v1568_v18 = vpop.f32.mrf.mxu1  ;;  %v3901_v12 = vld [vmem:[#allocation13 + $0x2c8] ss:$16 sps:$4 sm:$0xff]  }
 0x2ea   :  { %3992 = vtanh.f32 %v1607_v15  ;;  %v1609_v19 = vpop.f32.mrf.mxu0  ;;  %v3906_v15 = vld [vmem:[#allocation13 + $0x2ac] ss:$16 sps:$4 sm:$0xff]   ;;  %v3904_v17 = vld [vmem:[#allocation13 + $0x2a8] ss:$16 sps:$4 sm:$0xff]  }
 0x2eb   :  { %v3909_v18 = vld [vmem:[#allocation13 + $0x28c] ss:$16 sps:$4 sm:$0xff]  }
 0x2ec   :  { %v3946_v19 = vld [vmem:[#allocation16 + $0x78] sm:$0xff]  }
 0x2f5   :  { %v3991_v20 = vpop.eup %3990 }
 0x2f6   :  { %v4381_v24 = vpack.c.bf16 %v3991_v20, %v3991_v20  ;;  %v3947_v20 = vld [vmem:[#allocation16 + $0x38] sm:$0xff]  }
 0x2f7   :  { %v3993_v21 = vpop.eup %3992 }
 0x2f8   :  { %v1698_v22 = vpack.c.bf16 %v3993_v21, %v3993_v21  ;;  %v3948_v21 = vld [vmem:[#allocation16 + $0x70] sm:$0xff]  }
 0x2fa   :  { %2523 = vmatprep.mubr.bf16.mxu1 %v1698_v22 }
 0x2fb   :  { %2524 = vmatmul.mubr.bf16.vlgmr.msra.gmra.mxu1 %v4381_v24 }
 0x2fc   :  { %2574 = vmatpush1.bf16.msra.mxu1 %v3805_v23  ;;  %2605 = vmatprep.mubr.bf16.mxu1 %v1698_v22  ;;  %v3907_v22 = vld [vmem:[#allocation13 + $0x288] ss:$16 sps:$4 sm:$0xff]  }
 0x2fd   :  { %2575 = vmatprep.subr.bf16.mxu1 %v3813_v25  ;;  %v3949_v23 = vld [vmem:[#allocation16 + $0x30] sm:$0xff]   ;;  %v3912_v25 = vld [vmem:[#allocation13 + $0x26c] ss:$16 sps:$4 sm:$0xff]  }
 0x300   :  { %2576 = vmatpush1.bf16.msra.mxu1 %v3811_v26  ;;  %v3910_v26 = vld [vmem:[#allocation13 + $0x268] ss:$16 sps:$4 sm:$0xff]  }
 0x301   :  { %2577 = vmatprep.subr.bf16.mxu1 %v3819_v27  ;;  %v3951_v27 = vld [vmem:[#allocation16 + $0x28] sm:$0xff]  }
 0x304   :  { %2578 = vmatpush1.bf16.msra.mxu1 %v3817_v28  ;;  %v3915_v28 = vld [vmem:[#allocation13 + $0x24c] ss:$16 sps:$4 sm:$0xff]  }
 0x305   :  { %2579 = vmatprep.subr.bf16.mxu1 %v3825_v29  ;;  %v3913_v29 = vld [vmem:[#allocation13 + $0x248] ss:$16 sps:$4 sm:$0xff]  }
 0x308   :  { %2580 = vmatpush1.bf16.msra.mxu1 %v3823_v30  ;;  %v3918_v30 = vld [vmem:[#allocation13 + $0x22c] ss:$16 sps:$4 sm:$0xff]  }
 0x309   :  { %2581 = vmatprep.subr.bf16.mxu1 %v3831_v31  ;;  %v3916_v31 = vld [vmem:[#allocation13 + $0x228] ss:$16 sps:$4 sm:$0xff]  }
 0x30c   :  { %2582 = vmatpush1.bf16.msra.mxu1 %v3829_v33  ;;  %v3921_v33 = vld [vmem:[#allocation13 + $0x20c] ss:$16 sps:$4 sm:$0xff]  }
 0x30d   :  { %2583 = vmatprep.subr.bf16.mxu1 %v3837_v35  ;;  %v3919_v35 = vld [vmem:[#allocation13 + $0x208] ss:$16 sps:$4 sm:$0xff]  }
 0x310   :  { %2584 = vmatpush1.bf16.msra.mxu1 %v3835_v36  ;;  %v3924_v36 = vld [vmem:[#allocation13 + $0x3ec] ss:$16 sps:$4 sm:$0xff]  }
 0x311   :  { %2585 = vmatprep.subr.bf16.mxu1 %v3843_v37  ;;  %v3922_v37 = vld [vmem:[#allocation13 + $0x3e8] ss:$16 sps:$4 sm:$0xff]  }
 0x314   :  { %2586 = vmatpush1.bf16.msra.mxu1 %v3841_v38  ;;  %v3927_v38 = vld [vmem:[#allocation13 + $0x3cc] ss:$16 sps:$4 sm:$0xff]  }
 0x315   :  { %2587 = vmatprep.subr.bf16.mxu1 %v3849_v39  ;;  %v3925_v39 = vld [vmem:[#allocation13 + $0x3c8] ss:$16 sps:$4 sm:$0xff]  }
 0x318   :  { %2588 = vmatpush1.bf16.msra.mxu1 %v3847_v40  ;;  %v3930_v40 = vld [vmem:[#allocation13 + $0x3ac] ss:$16 sps:$4 sm:$0xff]  }
 0x319   :  { %2589 = vmatprep.subr.bf16.mxu1 %v3855_v41  ;;  %v3928_v41 = vld [vmem:[#allocation13 + $0x3a8] ss:$16 sps:$4 sm:$0xff]  }
 0x31c   :  { %2590 = vmatpush2.bf16.msra.mxu1 %v3853_v42  ;;  %v3933_v42 = vld [vmem:[#allocation13 + $0x38c] ss:$16 sps:$4 sm:$0xff]  }
 0x31d   :  { %2591 = vmatprep.subr.bf16.mxu1 %v3861_v43  ;;  %v3931_v43 = vld [vmem:[#allocation13 + $0x388] ss:$16 sps:$4 sm:$0xff]  }
 0x320   :  { %2592 = vmatpush2.bf16.msra.mxu1 %v3859_v44  ;;  %v3936_v44 = vld [vmem:[#allocation13 + $0x36c] ss:$16 sps:$4 sm:$0xff]  }
 0x321   :  { %2593 = vmatprep.subr.bf16.mxu1 %v3867_v45  ;;  %v3934_v45 = vld [vmem:[#allocation13 + $0x368] ss:$16 sps:$4 sm:$0xff]  }
 0x323   :  { %v1645_v49 = vpop.f32.mrf.mxu1 }
 0x324   :  { %v1646_v50 = vadd.f32 %v1645_v49, %v880_v46  ;;  %v1686_v51 = vpop.f32.mrf.mxu0  ;;  %2594 = vmatpush2.bf16.msra.mxu1 %v3865_v13  ;;  %v3939_v46 = vld [vmem:[#allocation13 + $0x34c] ss:$16 sps:$4 sm:$0xff]   ;;  %v3937_v13 = vld [vmem:[#allocation13 + $0x348] ss:$16 sps:$4 sm:$0xff]  }
 0x325   :  { %v1647_v53 = vpop.f32.mrf.mxu1  ;;  %2595 = vmatprep.subr.bf16.mxu1 %v3873_v47  ;;  %v3942_v47 = vld [vmem:[#allocation13 + $0x32c] ss:$16 sps:$4 sm:$0xff]  }
 0x326   :  { %v1687_v55 = vadd.f32 %v1686_v51, %v1646_v50  ;;  %v1648_v57 = vadd.f32 %v1647_v53, %v884_v48  ;;  %v1688_v58 = vpop.f32.mrf.mxu0  ;;  %v3940_v48 = vld [vmem:[#allocation13 + $0x328] ss:$16 sps:$4 sm:$0xff]   ;;  %v3945_v49 = vld [vmem:[#allocation13 + $0x30c] ss:$16 sps:$4 sm:$0xff]  }
 0x327   :  { %v1649_v60 = vpop.f32.mrf.mxu1  ;;  %v3943_v50 = vld [vmem:[#allocation13 + $0x308] ss:$16 sps:$4 sm:$0xff]   ;;  %v3954_v53 = vld [vmem:[#allocation16 + $0x58] sm:$0xff]  }
 0x328   :  { %v1689_v61 = vadd.f32 %v1688_v58, %v1648_v57  ;;  %v1690_v62 = vpop.f32.mrf.mxu0  ;;  %2596 = vmatpush2.bf16.msra.mxu1 %v3871_v52  ;;  %3994 = vtanh.f32 %v1687_v55  ;;  %v3952_v51 = vld [vmem:[#allocation16 + $0x60] sm:$0xff]   ;;  %v3956_v55 = vld [vmem:[#allocation16 + $0x50] sm:$0xff]   ;;  %v3958_v58 = vld [vmem:[#allocation16 + $0x48] sm:$0xff]  }
 0x329   :  { %v1650_v0 = vpop.f32.mrf.mxu1  ;;  %2597 = vmatprep.subr.bf16.mxu1 %v3879_v54  ;;  %v3953_v52 = vld [vmem:[#allocation16 + $0x20] sm:$0xff]   ;;  %v3955_v54 = vld [vmem:[#allocation16 + $0x18] sm:$0xff]   ;;  %v3957_v57 = vld [vmem:[#allocation16 + $0x10] sm:$0xff]  }
 0x32a   :  { %3996 = vtanh.f32 %v1689_v61  ;;  %v1691_v2 = vpop.f32.mrf.mxu0  ;;  %v3959_v60 = vld [vmem:[#allocation16 + $0x8] sm:$0xff]   ;;  %v3960_v61 = vld [vmem:[#allocation16 + $0x40] sm:$0xff]   ;;  %v3963_v0 = vld [vmem:[#allocation16 + $0xb8] sm:$0xff]  }
 0x32b   :  { %v3961_v62 = vld [vmem:[#allocation16] sm:$0xff]   ;;  %v3965_v2 = vld [vmem:[#allocation16 + $0xb0] sm:$0xff]  }
 0x32c   :  { %2598 = vmatpush2.bf16.msra.mxu1 %v3877_v63  ;;  %v3962_v63 = vld [vmem:[#allocation16 + $0xf8] sm:$0xff]  }
 0x32d   :  { %2599 = vmatprep.subr.bf16.mxu1 %v3885_v1  ;;  %v3964_v1 = vld [vmem:[#allocation16 + $0xf0] sm:$0xff]  }
 0x330   :  { %2600 = vmatpush2.bf16.msra.mxu1 %v3883_v3  ;;  %v3966_v3 = vld [vmem:[#allocation16 + $0xe8] sm:$0xff]  }
 0x331   :  { %2601 = vmatprep.subr.bf16.mxu1 %v3891_v4  ;;  %v3967_v4 = vld [vmem:[#allocation16 + $0xa8] sm:$0xff]  }
 0x334   :  { %2602 = vmatpush2.bf16.msra.mxu1 %v3889_v5 }
 0x335   :  { %2603 = vmatprep.subr.bf16.mxu1 %v3897_v6  ;;  %v3995_v8 = vpop.eup %3994  ;;  %v3968_v6 = vld [vmem:[#allocation16 + $0xe0] sm:$0xff]  }
 0x336   :  { %v4388_v10 = vpack.c.bf16 %v3995_v8, %v3995_v8 }
 0x337   :  { %v3997_v56 = vpop.eup %3996 }
 0x338   :  { %2604 = vmatpush2.bf16.msra.mxu1 %v3895_v7  ;;  %v1700_v59 = vpack.c.bf16 %v3997_v56, %v3997_v56  ;;  %v3969_v7 = vld [vmem:[#allocation16 + $0xa0] sm:$0xff]  }
 0x339   :  { %3401 = vmatprep.subr.bf16.mxu1 %v3946_v19  ;;  %v3977_v19 = vld [vmem:[#allocation16 + $0x80] sm:$0xff]  }
 0x33a   :  { %2564 = vmatprep.mubr.bf16.mxu0 %v1700_v59 }
 0x33b   :  { %2565 = vmatmul.mubr.bf16.vlgmr.msra.gmra.mxu0 %v4388_v10  ;;  %2606 = vmatmul.mubr.bf16.vlgmr.msra.gmra.mxu1 %v4381_v24  ;;  %v3950_v24 = vld [vmem:[#allocation16 + $0x68] sm:$0xff]  }
 0x33c   :  { %2615 = vmatpush1.bf16.msra.mxu0 %v3898_v9  ;;  %2646 = vmatprep.mubr.bf16.mxu0 %v1700_v59  ;;  %v3970_v59 = vld [vmem:[#allocation16 + $0xd8] sm:$0xff]  }
 0x33d   :  { %2616 = vmatprep.subr.bf16.mxu0 %v3903_v11  ;;  %3402 = vmatpush3.bf16.msra.mxu1 %v3947_v20  ;;  %v3971_v9 = vld [vmem:[#allocation16 + $0x98] sm:$0xff]   ;;  %v3972_v11 = vld [vmem:[#allocation16 + $0xd0] sm:$0xff]  }
 0x33e   :  { %3403 = vmatprep.subr.bf16.mxu1 %v3948_v21  ;;  %v1829_v20 = vld [vmem:[#allocation14] sm:$0xf] }
 0x33f   :  { %v1834_v21 = vrot.slane %v1829_v20, %v4347_v14 }
 0x340   :  { %2617 = vmatpush1.bf16.msra.mxu0 %v3901_v12  ;;  %v3973_v12 = vld [vmem:[#allocation16 + $0x90] sm:$0xff]  }
 0x341   :  { %2618 = vmatprep.subr.bf16.mxu0 %v3906_v15  ;;  %3404 = vmatpush3.bf16.msra.mxu1 %v3949_v23  ;;  %v3974_v15 = vld [vmem:[#allocation16 + $0xc8] sm:$0xff]  }
 0x342   :  { %3405 = vmatprep.subr.bf16.mxu1 %v3950_v24 }
 0x344   :  { %2619 = vmatpush1.bf16.msra.mxu0 %v3904_v17  ;;  %v3975_v17 = vld [vmem:[#allocation16 + $0x88] sm:$0xff]  }
 0x345   :  { %2620 = vmatprep.subr.bf16.mxu0 %v3909_v18  ;;  %3406 = vmatpush3.bf16.msra.mxu1 %v3951_v27  ;;  %v3976_v18 = vld [vmem:[#allocation16 + $0xc0] sm:$0xff]  }
 0x346   :  { %3407 = vmatprep.subr.bf16.mxu1 %v3952_v51 }
 0x348   :  { %2621 = vmatpush1.bf16.msra.mxu0 %v3907_v22  ;;  %v1838_v22 = vrot.slane %v1829_v20, %v4350_v16  ;;  %v1842_v16 = vrot.slane %v1829_v20, %v4355_v32 }
 0x349   :  { %2622 = vmatprep.subr.bf16.mxu0 %v3912_v25  ;;  %3408 = vmatpush3.bf16.msra.mxu1 %v3953_v52 }
 0x34a   :  { %3409 = vmatprep.subr.bf16.mxu1 %v3954_v53 }
 0x34c   :  { %2623 = vmatpush1.bf16.msra.mxu0 %v3910_v26 }
 0x34d   :  { %2624 = vmatprep.subr.bf16.mxu0 %v3915_v28  ;;  %3410 = vmatpush3.bf16.msra.mxu1 %v3955_v54 }
 0x34e   :  { %3411 = vmatprep.subr.bf16.mxu1 %v3956_v55  ;;  %v3366_v55 = vld [vmem:[%s4419_s10] ss:$0 sm:$0xff]  ;;  %s4188_s10 = scalar_lea.vmem %s3031_s1, 128 }
 0x34f   :  { %p4189_p3 = scmp.ne.s32.totalorder %s3031_s1, %s4188_s10  ;;  %p4194_p5 = scmp.lt.s32.totalorder %s4188_s10, %s4188_s10 }
 0x350   :  { %2625 = vmatpush1.bf16.msra.mxu0 %v3913_v29 }
 0x351   :  { %2626 = vmatprep.subr.bf16.mxu0 %v3918_v30  ;;  %3412 = vmatpush3.bf16.msra.mxu1 %v3957_v57  ;;  %p4195_p6 = por %p4194_p5, %p4193_p4 }
 0x352   :  { %3413 = vmatprep.subr.bf16.mxu1 %v3958_v58 }
 0x353   :  { %p4196_p7 = pnand %p4195_p6, %p4189_p3 }
 0x354   :  { %2627 = vmatpush1.bf16.msra.mxu0 %v3916_v31 }
 0x355   :  { %2628 = vmatprep.subr.bf16.mxu0 %v3921_v33  ;;  %3414 = vmatpush3.bf16.msra.mxu1 %v3959_v60 }
 0x356   :  { %3415 = vmatprep.subr.bf16.mxu1 %v3960_v61 }
 0x358   :  { %2629 = vmatpush1.bf16.msra.mxu0 %v3919_v35 }
 0x359   :  { %2630 = vmatprep.subr.bf16.mxu0 %v3924_v36  ;;  %3416 = vmatpush3.bf16.msra.mxu1 %v3961_v62 }
 0x35c   :  { %2631 = vmatpush2.bf16.msra.mxu0 %v3922_v37 }
 0x35d   :  { %2632 = vmatprep.subr.bf16.mxu0 %v3927_v38 }
 0x360   :  { %2633 = vmatpush2.bf16.msra.mxu0 %v3925_v39 }
 0x361   :  { %2634 = vmatprep.subr.bf16.mxu0 %v3930_v40  ;;  %v1846_v40 = vrot.slane %v1829_v20, %v4358_v34 }
 0x364   :  { %2635 = vmatpush2.bf16.msra.mxu0 %v3928_v41 }
 0x365   :  { %2636 = vmatprep.subr.bf16.mxu0 %v3933_v42 }
 0x368   :  { %2637 = vmatpush2.bf16.msra.mxu0 %v3931_v43 }
 0x369   :  { %2638 = vmatprep.subr.bf16.mxu0 %v3936_v44 }
 0x36c   :  { %2639 = vmatpush2.bf16.msra.mxu0 %v3934_v45 }
 0x36d   :  { %2640 = vmatprep.subr.bf16.mxu0 %v3939_v46 }
 0x370   :  { %2641 = vmatpush2.bf16.msra.mxu0 %v3937_v13 }
 0x371   :  { %2642 = vmatprep.subr.bf16.mxu0 %v3942_v47 }
 0x374   :  { %2643 = vmatpush2.bf16.msra.mxu0 %v3940_v48 }
 0x375   :  { %2644 = vmatprep.subr.bf16.mxu0 %v3945_v49 }
 0x378   :  { %2645 = vmatpush2.bf16.msra.mxu0 %v3943_v50 }
 0x379   :  { %3423 = vmatprep.subr.bf16.mxu0 %v3962_v63 }
 0x37b   :  { %2647 = vmatmul.mubr.bf16.vlgmr.msra.gmra.mxu0 %v4388_v10 }
 0x37c   :  { %3424 = vmatpush3.bf16.msra.mxu0 %v3963_v0 }
 0x37d   :  { %3425 = vmatprep.subr.bf16.mxu0 %v3964_v1  ;;  %v3399_v1 = vld [vmem:[%s4420_s11] ss:$0 sm:$0xff] }
 0x380   :  { %3426 = vmatpush3.bf16.msra.mxu0 %v3965_v2 }
 0x381   :  { %3427 = vmatprep.subr.bf16.mxu0 %v3966_v3  ;;  %v3400_v3 = vld [vmem:[%s4421_s12] ss:$0 sm:$0xff] }
 0x384   :  { %3428 = vmatpush3.bf16.msra.mxu0 %v3967_v4 }
 0x385   :  { %3429 = vmatprep.subr.bf16.mxu0 %v3968_v6 }
 0x388   :  { %3430 = vmatpush3.bf16.msra.mxu0 %v3969_v7 }
 0x389   :  { %3431 = vmatprep.subr.bf16.mxu0 %v3970_v59 }
 0x38c   :  { %3432 = vmatpush3.bf16.msra.mxu0 %v3971_v9 }
 0x38d   :  { %3433 = vmatprep.subr.bf16.mxu0 %v3972_v11 }
 0x390   :  { %3434 = vmatpush3.bf16.msra.mxu0 %v3973_v12 }
 0x391   :  { %3435 = vmatprep.subr.bf16.mxu0 %v3974_v15 }
 0x394   :  { %3436 = vmatpush3.bf16.msra.mxu0 %v3975_v17 }
 0x395   :  { %3437 = vmatprep.subr.bf16.mxu0 %v3976_v18 }
 0x398   :  { %3438 = vmatpush3.bf16.msra.mxu0 %v3977_v19 }
 0x3bb   :  { %v2525_v5 = vpop.f32.mrf.mxu1 }
 0x3bc   :  { %v2526_v23 = vadd.f32 %v2525_v5, %v1834_v21 }
 0x3bd   :  { %v2527_v8 = vpop.f32.mrf.mxu1 }
 0x3be   :  { %v2528_v26 = vadd.f32 %v2527_v8, %v1838_v22 }
 0x3bf   :  { %v2529_v56 = vpop.f32.mrf.mxu1 }
 0x3c1   :  { %v2530_v10 = vpop.f32.mrf.mxu1 }
 0x3fb   :  { %v2566_v25 = vpop.f32.mrf.mxu0  ;;  %v2607_v24 = vpop.f32.mrf.mxu1 }
 0x3fc   :  { %v2567_v27 = vadd.f32 %v2566_v25, %v2526_v23  ;;  %v2608_v41 = vadd.f32 %v2607_v24, %v1842_v16 }
 0x3fd   :  { %v2568_v28 = vpop.f32.mrf.mxu0  ;;  %v2609_v29 = vpop.f32.mrf.mxu1 }
 0x3fe   :  { %v2569_v30 = vadd.f32 %v2568_v28, %v2528_v26  ;;  %3998 = vtanh.f32 %v2567_v27  ;;  %v2610_v43 = vadd.f32 %v2609_v29, %v1846_v40 }
 0x3ff   :  { %v2570_v31 = vpop.f32.mrf.mxu0  ;;  %v2611_v33 = vpop.f32.mrf.mxu1 }
 0x400   :  { %4000 = vtanh.f32 %v2569_v30 }
 0x401   :  { %v2571_v35 = vpop.f32.mrf.mxu0  ;;  %v2612_v36 = vpop.f32.mrf.mxu1 }
 0x40b   :  { %v3999_v37 = vpop.eup %3998 }
 0x40c   :  { %v2659_v14 = vpack.c.bf16 %v3999_v37, %v3999_v37 }
 0x40d   :  { %v4001_v38 = vpop.eup %4000 }
 0x40e   :  { %v2660_v39 = vpack.c.bf16 %v4001_v38, %v4001_v38 }
 0x410   :  { %2958 = vmatprep.mubr.bf16.mxu1 %v2660_v39 }
 0x411   :  { %2959 = vmatmul.mubr.bf16.vlgmr.msra.gmra.mxu1 %v2659_v14 }
 0x43b   :  { %v2648_v42 = vpop.f32.mrf.mxu0 }
 0x43c   :  { %v2649_v44 = vadd.f32 %v2648_v42, %v2608_v41 }
 0x43d   :  { %v2650_v45 = vpop.f32.mrf.mxu0 }
 0x43e   :  { %v2651_v46 = vadd.f32 %v2650_v45, %v2610_v43  ;;  %4002 = vtanh.f32 %v2649_v44 }
 0x43f   :  { %v2652_v13 = vpop.f32.mrf.mxu0 }
 0x440   :  { %4004 = vtanh.f32 %v2651_v46 }
 0x441   :  { %v2653_v47 = vpop.f32.mrf.mxu0 }
 0x44b   :  { %v4003_v48 = vpop.eup %4002 }
 0x44c   :  { %v2661_v51 = vpack.c.bf16 %v4003_v48, %v4003_v48 }
 0x44d   :  { %v4005_v49 = vpop.eup %4004 }
 0x44e   :  { %v2662_v50 = vpack.c.bf16 %v4005_v49, %v4005_v49 }
 0x450   :  { %2998 = vmatprep.mubr.bf16.mxu0 %v2662_v50 }
 0x451   :  { %2999 = vmatmul.mubr.bf16.vlgmr.msra.gmra.mxu0 %v2661_v51 }
 0x4d1   :  { %v3417_v52 = vpop.f32.mrf.mxu1 }
 0x4d3   :  { %v3418_v32 = vpop.f32.mrf.mxu1 }
 0x4d4   :  { %v3419_v54 = vadd.f32 %v3418_v32, %v3417_v52 }
 0x4d5   :  { %v3420_v53 = vpop.f32.mrf.mxu1 }
 0x4d6   :  { %v2961_v60 = vadd.f32 %v3419_v54, %v3366_v55 }
 0x4d7   :  { %v3421_v34 = vpop.f32.mrf.mxu1 }
 0x511   :  { %v3439_v57 = vpop.f32.mrf.mxu0 }
 0x513   :  { %v3440_v58 = vpop.f32.mrf.mxu0 }
 0x514   :  { %v3441_v61 = vadd.f32 %v3440_v58, %v3439_v57 }
 0x515   :  { %v3442_v62 = vpop.f32.mrf.mxu0 }
 0x516   :  { %v3001_v63 = vadd.f32 %v3441_v61, %v2961_v60 }
 0x517   :  { %v3443_v0 = vpop.f32.mrf.mxu0 }
 0x518   :  { %4006 = vtanh.f32 %v3001_v63 }
 0x525   :  { %v4007_v2 = vpop.eup %4006 }
 0x526   :  { %v3014_v4 = vmul.f32 %v4007_v2, %v3399_v1 }
 0x528   :  { %v3022_v5 = vadd.f32 %v3400_v3, %v3014_v4 }
 0x52a   :  { %3023 = vst [vmem:[#allocation17] sm:$0xff] %v3022_v5 }
 0x52b   :  { %4199 = shalt.err (!%p4196_p7)
}
 0x52c   :  { %3033 = dma.vmem_to_hbm [thread:$0]  %s3031_s1, 128, %s4422_s13, [#allocation4]  }
 0x52d   :  { %4218 = dma.done.wait [#allocation4], 128  }
 0x52e   :  { %4219 = vsyncadd [#allocation4], 4294967168 }
 0x52f   :  { %3037 = vsyncpa [#allocation3], 1 }
 0x530   :  { %3038 = vsyncpa [#allocation6], 1 }
 0x531   :  { %3039 = vsyncpa [#allocation9], 1 }
 0x532   :  { %3040 = vsyncpa [#allocation12], 1 }
 0x533   :  { %3041 = vsyncpa [#allocation15], 1 }
 0x534   :  { %3042 = vsyncpa [#allocation4], 1 }

</bundles_post_ra>
